<compile_context>
chip_gen: v7x
topology: tpu7x:2x2x1
jax: 0.10.0
libtpu: 0.0.40
codegen_flags: <defaults>
</compile_context>

<pallas_src>
import math

import jax
import jax.numpy as jnp
from jax import lax
from jax.experimental import pallas as pl
from jax.experimental.pallas import tpu as pltpu

# -------------------- model hyper-parameters (small synthetic BERT) ----------
VOCAB = 128
HIDDEN = 32
N_LAYERS = 2
N_HEADS = 4
HEAD_DIM = HIDDEN // N_HEADS
INTERMEDIATE = 64
MAX_POS = 16
TYPE_VOCAB = 2
NUM_CLASS = 3
BATCH = 2
SEQ = 8
LN_EPS = 1e-12

M_ROWS = BATCH * SEQ          # 16 activation rows (multiple of 8 sublanes)
HP = 128                      # padded hidden lanes
CP = 128                      # padded num_class lanes
BATCH_PAD = 8                 # padded logit rows (full sublane tile)

SCALE = 1.0 / math.sqrt(HEAD_DIM)
INV_SQRT2 = 1.0 / math.sqrt(2.0)


# -------------------- fused encoder + head kernel (grid over layers) ---------
def _bert_kernel(emb_ref, mask_ref, cvec_ref, hw_ref, lw_ref, lvec_ref,
                 h_ref, logits_ref):
    # cvec rows: 0=emb_ln_g 1=emb_ln_b 2=pool_b 3=fc_b
    # lvec rows: 0=bqkv 1=bo 2=b1 3=b2 4=ln1_g 5=ln1_b 6=ln2_g 7=ln2_b
    # lw lanes : [0:128]=Wqkv  [128:256]=Wo  [256:384]=W1  [384:512]=W2
    cv = cvec_ref[...]
    lv = lvec_ref[...]

    inv_h = 1.0 / HIDDEN

    def layernorm(y, g, b):
        # y padded lanes are exactly 0, so 128-lane sums equal 32-lane sums.
        mu = jnp.sum(y, axis=-1, keepdims=True) * inv_h
        ex2 = jnp.sum(y * y, axis=-1, keepdims=True) * inv_h
        var = ex2 - mu * mu
        # zero-padded g/b force padded output lanes back to 0
        return (y - mu) * lax.rsqrt(var + LN_EPS) * g + b

    # layer 0: embedding LayerNorm straight into the resident hidden output ref
    @pl.when(pl.program_id(0) == 0)
    def _():
        h_ref[...] = layernorm(emb_ref[...], cv[0:1, :], cv[1:2, :])

    h = h_ref[...]                                           # [M, HP] f32, pads = 0

    # fused QKV projection: [M,128]x[128,128] -> lanes [q(32)|k(32)|v(32)|0(32)]
    qkv = jnp.dot(h.astype(jnp.bfloat16), lw_ref[:, 0:HP],
                  preferred_element_type=jnp.float32) + lv[0:1, :]

    # attention over all rows at once; block-diagonal batch mask (built host-side)
    # keeps batches from attending to each other.
    amask = mask_ref[...][:, 0:M_ROWS]                       # [M, M] additive
    ctx_heads = []
    for hd in range(N_HEADS):
        c0 = hd * HEAD_DIM
        q_h = qkv[:, c0:c0 + HEAD_DIM].astype(jnp.bfloat16)
        k_h = qkv[:, HIDDEN + c0:HIDDEN + c0 + HEAD_DIM].astype(jnp.bfloat16)
        v_h = qkv[:, 2 * HIDDEN + c0:2 * HIDDEN + c0 + HEAD_DIM].astype(jnp.bfloat16)
        # contract last dims of both operands (no explicit transpose)
        s = lax.dot_general(q_h, k_h, (((1,), (1,)), ((), ())),
                            preferred_element_type=jnp.float32) * SCALE + amask
        m = jnp.max(s, axis=-1, keepdims=True)
        p = jnp.exp(s - m)
        p = p * pl.reciprocal(jnp.sum(p, axis=-1, keepdims=True), approx=True)
        ctx_heads.append(jnp.dot(p.astype(jnp.bfloat16), v_h,
                                 preferred_element_type=jnp.float32))    # [M, Dh]

    # fuse the 4 per-head output projections into a single [M,32]x[32,128] dot
    ctx = jnp.concatenate(ctx_heads, axis=-1)                # [M, HIDDEN]
    attn = jnp.dot(ctx.astype(jnp.bfloat16), lw_ref[0:HIDDEN, HP:2 * HP],
                   preferred_element_type=jnp.float32) + lv[1:2, :]      # [M, HP]

    h1 = layernorm(attn + h, lv[4:5, :], lv[5:6, :])

    # FFN: GELU(h1 @ W1 + b1) @ W2 + b2, all lane-dense 128-wide
    inter = jnp.dot(h1.astype(jnp.bfloat16), lw_ref[:, 2 * HP:3 * HP],
                    preferred_element_type=jnp.float32) + lv[2:3, :]
    inter = 0.5 * inter * (1.0 + lax.erf(inter * INV_SQRT2))
    ffn = jnp.dot(inter.astype(jnp.bfloat16), lw_ref[:, 3 * HP:4 * HP],
                  preferred_element_type=jnp.float32) + lv[3:4, :]
    h2 = layernorm(ffn + h1, lv[6:7, :], lv[7:8, :])

    h_ref[...] = h2                                          # carried to next layer

    # final layer: fused pooler(tanh) + classifier head on the CLS rows
    @pl.when(pl.program_id(0) == pl.num_programs(0) - 1)
    def _():
        cls_rows = [h2[b * SEQ:b * SEQ + 1, :] for b in range(BATCH)]
        cls_rows.append(jnp.zeros((BATCH_PAD - BATCH, HP), jnp.float32))
        cls = jnp.concatenate(cls_rows, axis=0)              # [8, HP]
        pooled = jnp.tanh(jnp.dot(cls.astype(jnp.bfloat16), hw_ref[:, 0:HP],
                                  preferred_element_type=jnp.float32) + cv[2:3, :])
        # TODO(synk): nn.Dropout(0.3) is identity in eval mode; training-mode
        # stochastic dropout not implemented.
        logits_ref[...] = jnp.dot(pooled.astype(jnp.bfloat16), hw_ref[:, HP:2 * HP],
                                  preferred_element_type=jnp.float32) + cv[3:4, :]


def run_bert(emb_pad, mask2d, cvec, head_w, lw, lvec):
    def const2(r, c):
        return pl.BlockSpec((r, c), lambda l: (0, 0))

    def per_layer(r, c):
        return pl.BlockSpec((None, r, c), lambda l: (l, 0, 0))

    hidden, logits = pl.pallas_call(
        _bert_kernel,
        out_shape=(jax.ShapeDtypeStruct((M_ROWS, HP), jnp.float32),
                   jax.ShapeDtypeStruct((BATCH_PAD, CP), jnp.float32)),
        grid=(N_LAYERS,),
        in_specs=[const2(M_ROWS, HP),        # embeddings (pre-LN)
                  const2(M_ROWS, 128),       # combined additive attention mask
                  const2(8, 128),            # constant vectors (emb LN, head biases)
                  const2(HP, 2 * HP),        # head weights (pool_w | fc_w), bf16
                  per_layer(HP, 4 * HP),     # per-layer weight slab, bf16
                  per_layer(8, 128)],        # per-layer bias/LN slab, f32
        out_specs=[pl.BlockSpec((M_ROWS, HP), lambda l: (0, 0)),
                   pl.BlockSpec((BATCH_PAD, CP), lambda l: (0, 0))],
        compiler_params=pltpu.CompilerParams(
            dimension_semantics=("arbitrary",)),   # layers are sequential
    )(emb_pad, mask2d, cvec, head_w, lw, lvec)
    return hidden, logits


# -------------------- parameter construction ---------------------------------
def init_params(key):
    std = 0.02

    def norm(k, shape):
        return std * jax.random.normal(k, shape, dtype=jnp.float32)

    keys = iter(jax.random.split(key, 8 + N_LAYERS * 16))
    params = {
        "word_emb": norm(next(keys), (VOCAB, HIDDEN)),
        "pos_emb": norm(next(keys), (MAX_POS, HIDDEN)),
        "type_emb": norm(next(keys), (TYPE_VOCAB, HIDDEN)),
        "emb_ln_g": jnp.ones((HIDDEN,), jnp.float32),
        "emb_ln_b": jnp.zeros((HIDDEN,), jnp.float32),
        "pool_w": norm(next(keys), (HIDDEN, HIDDEN)),
        "pool_b": jnp.zeros((HIDDEN,), jnp.float32),
        "fc_w": norm(next(keys), (HIDDEN, NUM_CLASS)),
        "fc_b": jnp.zeros((NUM_CLASS,), jnp.float32),
        "layers": [],
    }
    for _ in range(N_LAYERS):
        layer = {
            "wq": norm(next(keys), (HIDDEN, HIDDEN)),
            "bq": jnp.zeros((HIDDEN,), jnp.float32),
            "wk": norm(next(keys), (HIDDEN, HIDDEN)),
            "bk": jnp.zeros((HIDDEN,), jnp.float32),
            "wv": norm(next(keys), (HIDDEN, HIDDEN)),
            "bv": jnp.zeros((HIDDEN,), jnp.float32),
            "wo": norm(next(keys), (HIDDEN, HIDDEN)),
            "bo": jnp.zeros((HIDDEN,), jnp.float32),
            "ln1_g": jnp.ones((HIDDEN,), jnp.float32),
            "ln1_b": jnp.zeros((HIDDEN,), jnp.float32),
            "w1": norm(next(keys), (HIDDEN, INTERMEDIATE)),
            "b1": jnp.zeros((INTERMEDIATE,), jnp.float32),
            "w2": norm(next(keys), (INTERMEDIATE, HIDDEN)),
            "b2": jnp.zeros((HIDDEN,), jnp.float32),
            "ln2_g": jnp.ones((HIDDEN,), jnp.float32),
            "ln2_b": jnp.zeros((HIDDEN,), jnp.float32),
        }
        params["layers"].append(layer)
    return params


# -------------------- padding / packing glue ----------------------------------
def _pad2(a, rows, cols, dtype=jnp.float32):
    out = jnp.zeros((rows, cols), dtype)
    return out.at[:a.shape[0], :a.shape[1]].set(a.astype(dtype))


def _pad_row(v, cols, dtype=jnp.float32):
    out = jnp.zeros((cols,), dtype)
    return out.at[:v.shape[0]].set(v.astype(dtype))


def pack_encoder_params(params):
    lw_list, lvec_list = [], []
    for layer in params["layers"]:
        wqkv = _pad2(jnp.concatenate([layer["wq"], layer["wk"], layer["wv"]],
                                     axis=1), HP, HP, jnp.bfloat16)
        wo = _pad2(layer["wo"], HP, HP, jnp.bfloat16)
        w1 = _pad2(layer["w1"], HP, HP, jnp.bfloat16)
        w2 = _pad2(layer["w2"], HP, HP, jnp.bfloat16)
        lw_list.append(jnp.concatenate([wqkv, wo, w1, w2], axis=1))   # [128, 512]
        lvec_list.append(jnp.stack([
            _pad_row(jnp.concatenate([layer["bq"], layer["bk"], layer["bv"]]), 128),
            _pad_row(layer["bo"], 128),
            _pad_row(layer["b1"], 128),
            _pad_row(layer["b2"], 128),
            _pad_row(layer["ln1_g"], 128),   # zero padding on gamma keeps padded
            _pad_row(layer["ln1_b"], 128),   # lanes exactly zero through every LN
            _pad_row(layer["ln2_g"], 128),
            _pad_row(layer["ln2_b"], 128),
        ], axis=0))                                                   # [8, 128]
    return jnp.stack(lw_list, axis=0), jnp.stack(lvec_list, axis=0)


def pack_const_params(params):
    cvec = jnp.stack([
        _pad_row(params["emb_ln_g"], 128),
        _pad_row(params["emb_ln_b"], 128),
        _pad_row(params["pool_b"], 128),
        _pad_row(params["fc_b"], 128),
        jnp.zeros((128,), jnp.float32),
        jnp.zeros((128,), jnp.float32),
        jnp.zeros((128,), jnp.float32),
        jnp.zeros((128,), jnp.float32),
    ], axis=0)                                                        # [8, 128]
    head_w = jnp.concatenate([_pad2(params["pool_w"], HP, HP, jnp.bfloat16),
                              _pad2(params["fc_w"], HP, CP, jnp.bfloat16)],
                             axis=1)                                  # [128, 256]
    return cvec, head_w


# -------------------- forward pass (matches BertClassifier.forward) ----------
def bert_classifier_forward(params, input_ids, attention_mask, labels):
    B, S = input_ids.shape

    # embeddings (gathers are glue); LN runs inside the fused kernel
    emb = (params["word_emb"][input_ids]
           + params["pos_emb"][jnp.arange(S)][None, :, :]
           + params["type_emb"][0][None, None, :])                    # [B, S, H]
    emb_pad = jnp.zeros((B * S, HP), jnp.float32).at[:, :HIDDEN].set(
        emb.reshape(B * S, HIDDEN))

    # combined additive mask over flattened rows: BERT key mask inside a batch,
    # -1e4 on cross-batch blocks so batches cannot attend to each other.
    key_mask = ((1.0 - attention_mask.astype(jnp.float32)) * -10000.0).reshape(B * S)
    batch_id = jnp.arange(B * S) // S
    same_batch = batch_id[:, None] == batch_id[None, :]
    mask2d = jnp.where(same_batch, key_mask[None, :], -10000.0)       # [M, M]
    mask_pad = jnp.zeros((B * S, 128), jnp.float32).at[:, :B * S].set(mask2d)

    cvec, head_w = pack_const_params(params)
    lw, lvec = pack_encoder_params(params)

    _, logits_pad = run_bert(emb_pad, mask_pad, cvec, head_w, lw, lvec)
    logits = logits_pad[:B, :NUM_CLASS]
    return logits, labels


# -------------------- driver --------------------------------------------------
if __name__ == "__main__":
    key = jax.random.PRNGKey(0)
    k_params, k_ids, k_labels = jax.random.split(key, 3)

    params = init_params(k_params)

    input_ids = jax.random.randint(k_ids, (BATCH, SEQ), 0, VOCAB, dtype=jnp.int32)
    attention_mask = jnp.ones((BATCH, SEQ), dtype=jnp.int32).at[1, SEQ - 2:].set(0)
    labels = jax.random.randint(k_labels, (BATCH,), 0, NUM_CLASS, dtype=jnp.int32)

    fwd = jax.jit(bert_classifier_forward)
    logits, out_labels = fwd(params, input_ids, attention_mask, labels)
    jax.block_until_ready((logits, out_labels))

    assert logits.shape == (BATCH, NUM_CLASS)
    assert out_labels.shape == (BATCH,)
    print("KERNEL_OK")
</pallas_src>

<mosaic_0001>
module attributes {stable_mosaic.version = 11 : i64} {
  func.func @_bert_kernel(%arg0: i32, %arg1: memref<16x128xf32, #tpu.memory_space<vmem>>, %arg2: memref<16x128xf32, #tpu.memory_space<vmem>>, %arg3: memref<8x128xf32, #tpu.memory_space<vmem>>, %arg4: memref<128x256xbf16, #tpu.memory_space<vmem>>, %arg5: memref<1x128x512xbf16, #tpu.memory_space<vmem>>, %arg6: memref<1x8x128xf32, #tpu.memory_space<vmem>>, %arg7: memref<16x128xf32, #tpu.memory_space<vmem>>, %arg8: memref<8x128xf32, #tpu.memory_space<vmem>>) attributes {dimension_semantics = [#tpu.dimension_semantics<arbitrary>], iteration_bounds = array<i64: 2>, scalar_prefetch = 0 : i64, scratch_operands = 0 : i64, tpu.core_type = #tpu.core_type<tc>, window_params = [{pipeline_mode = #tpu.pipeline_mode<synchronous>, transform_indices = @transform_0, window_bounds = array<i64: 16, 128>}, {pipeline_mode = #tpu.pipeline_mode<synchronous>, transform_indices = @transform_1, window_bounds = array<i64: 16, 128>}, {pipeline_mode = #tpu.pipeline_mode<synchronous>, transform_indices = @transform_2, window_bounds = array<i64: 8, 128>}, {pipeline_mode = #tpu.pipeline_mode<synchronous>, transform_indices = @transform_3, window_bounds = array<i64: 128, 256>}, {transform_indices = @transform_4, window_bounds = array<i64: 1, 128, 512>}, {transform_indices = @transform_5, window_bounds = array<i64: 1, 8, 128>}, {pipeline_mode = #tpu.pipeline_mode<synchronous>, transform_indices = @transform_6, window_bounds = array<i64: 16, 128>}, {pipeline_mode = #tpu.pipeline_mode<synchronous>, transform_indices = @transform_7, window_bounds = array<i64: 8, 128>}]} {
    %c0 = arith.constant 0 : index
    %c0_0 = arith.constant 0 : index
    %0 = vector.load %arg3[%c0, %c0_0] : memref<8x128xf32, #tpu.memory_space<vmem>>, vector<8x128xf32>
    %c0_1 = arith.constant 0 : index
    %c0_2 = arith.constant 0 : index
    %c0_3 = arith.constant 0 : index
    %1 = vector.load %arg6[%c0_1, %c0_2, %c0_3] : memref<1x8x128xf32, #tpu.memory_space<vmem>>, vector<1x8x128xf32>
    %2 = vector.shape_cast %1 : vector<1x8x128xf32> to vector<8x128xf32>
    %c0_i32 = arith.constant 0 : i32
    %3 = arith.cmpi eq, %arg0, %c0_i32 : i32
    %4 = arith.extui %3 : i1 to i32
    %c0_i32_4 = arith.constant 0 : i32
    %5 = arith.cmpi ne, %4, %c0_i32_4 : i32
    scf.if %5 {
      %c0_57 = arith.constant 0 : index
      %c0_58 = arith.constant 0 : index
      %188 = vector.load %arg1[%c0_57, %c0_58] : memref<16x128xf32, #tpu.memory_space<vmem>>, vector<16x128xf32>
      %189 = vector.extract_strided_slice %0 {offsets = [0, 0], sizes = [1, 128], strides = [1, 1]} : vector<8x128xf32> to vector<1x128xf32>
      %190 = vector.extract_strided_slice %0 {offsets = [1, 0], sizes = [1, 128], strides = [1, 1]} : vector<8x128xf32> to vector<1x128xf32>
      %cst_59 = arith.constant dense<0.000000e+00> : vector<16xf32>
      %191 = vector.multi_reduction <add>, %188, %cst_59 [1] : vector<16x128xf32> to vector<16xf32>
      %192 = vector.shape_cast %191 : vector<16xf32> to vector<16x1xf32>
      %cst_60 = arith.constant 3.125000e-02 : f32
      %193 = vector.broadcast %cst_60 : f32 to vector<16x1xf32>
      %194 = arith.mulf %192, %193 : vector<16x1xf32>
      %195 = arith.mulf %188, %188 : vector<16x128xf32>
      %cst_61 = arith.constant dense<0.000000e+00> : vector<16xf32>
      %196 = vector.multi_reduction <add>, %195, %cst_61 [1] : vector<16x128xf32> to vector<16xf32>
      %197 = vector.shape_cast %196 : vector<16xf32> to vector<16x1xf32>
      %cst_62 = arith.constant 3.125000e-02 : f32
      %198 = vector.broadcast %cst_62 : f32 to vector<16x1xf32>
      %199 = arith.mulf %197, %198 : vector<16x1xf32>
      %200 = arith.mulf %194, %194 : vector<16x1xf32>
      %201 = arith.subf %199, %200 : vector<16x1xf32>
      %202 = vector.broadcast %194 : vector<16x1xf32> to vector<16x128xf32>
      %203 = arith.subf %188, %202 : vector<16x128xf32>
      %cst_63 = arith.constant 9.99999996E-13 : f32
      %204 = vector.broadcast %cst_63 : f32 to vector<16x1xf32>
      %205 = arith.addf %201, %204 : vector<16x1xf32>
      %206 = math.rsqrt %205 : vector<16x1xf32>
      %207 = vector.broadcast %206 : vector<16x1xf32> to vector<16x128xf32>
      %208 = arith.mulf %203, %207 : vector<16x128xf32>
      %209 = vector.broadcast %189 : vector<1x128xf32> to vector<16x128xf32>
      %210 = arith.mulf %208, %209 : vector<16x128xf32>
      %211 = vector.broadcast %190 : vector<1x128xf32> to vector<16x128xf32>
      %212 = arith.addf %210, %211 : vector<16x128xf32>
      %c0_64 = arith.constant 0 : index
      %c0_65 = arith.constant 0 : index
      %213 = vector.load %arg7[%c0_64, %c0_65] : memref<16x128xf32, #tpu.memory_space<vmem>>, vector<16x128xf32>
      tpu.vector_store %arg7[%c0_64, %c0_65], %212 {strides = array<i32>} : memref<16x128xf32, #tpu.memory_space<vmem>>, vector<16x128xf32>,
    } else {
    }
    %c0_5 = arith.constant 0 : index
    %c0_6 = arith.constant 0 : index
    %6 = vector.load %arg7[%c0_5, %c0_6] : memref<16x128xf32, #tpu.memory_space<vmem>>, vector<16x128xf32>
    %7 = arith.truncf %6 : vector<16x128xf32> to vector<16x128xbf16>
    %c0_7 = arith.constant 0 : index
    %c0_8 = arith.constant 0 : index
    %c0_9 = arith.constant 0 : index
    %8 = vector.load %arg5[%c0_7, %c0_8, %c0_9] : memref<1x128x512xbf16, #tpu.memory_space<vmem>>, vector<1x128x128xbf16>
    %9 = vector.shape_cast %8 : vector<1x128x128xbf16> to vector<128x128xbf16>
    %cst = arith.constant dense<0.000000e+00> : vector<16x128xf32>
    %10 = tpu.matmul %7, %9, %cst {dimension_numbers = #tpu.dot_dimension_numbers<[1], [0], [0], [1], [0, 0, 1, 1], [], []>} : vector<16x128xbf16>, vector<128x128xbf16>, vector<16x128xf32> -> vector<16x128xf32>
    %11 = vector.extract_strided_slice %2 {offsets = [0, 0], sizes = [1, 128], strides = [1, 1]} : vector<8x128xf32> to vector<1x128xf32>
    %12 = vector.broadcast %11 : vector<1x128xf32> to vector<16x128xf32>
    %13 = arith.addf %10, %12 : vector<16x128xf32>
    %c0_10 = arith.constant 0 : index
    %c0_11 = arith.constant 0 : index
    %14 = vector.load %arg2[%c0_10, %c0_11] : memref<16x128xf32, #tpu.memory_space<vmem>>, vector<16x128xf32>
    %15 = vector.extract_strided_slice %14 {offsets = [0, 0], sizes = [16, 16], strides = [1, 1]} : vector<16x128xf32> to vector<16x16xf32>
    %16 = vector.extract_strided_slice %13 {offsets = [0, 0], sizes = [16, 8], strides = [1, 1]} : vector<16x128xf32> to vector<16x8xf32>
    %17 = arith.truncf %16 : vector<16x8xf32> to vector<16x8xbf16>
    %18 = vector.extract_strided_slice %13 {offsets = [0, 32], sizes = [16, 8], strides = [1, 1]} : vector<16x128xf32> to vector<16x8xf32>
    %19 = arith.truncf %18 : vector<16x8xf32> to vector<16x8xbf16>
    %20 = vector.extract_strided_slice %13 {offsets = [0, 64], sizes = [16, 8], strides = [1, 1]} : vector<16x128xf32> to vector<16x8xf32>
    %21 = arith.truncf %20 : vector<16x8xf32> to vector<16x8xbf16>
    %cst_12 = arith.constant dense<0.000000e+00> : vector<16x16xf32>
    %22 = tpu.matmul %17, %19, %cst_12 {dimension_numbers = #tpu.dot_dimension_numbers<[1], [1], [0], [0], [0, 0, 1, 0], [], []>} : vector<16x8xbf16>, vector<16x8xbf16>, vector<16x16xf32> -> vector<16x16xf32>
    %cst_13 = arith.constant 0.353553385 : f32
    %23 = vector.broadcast %cst_13 : f32 to vector<16x16xf32>
    %24 = arith.mulf %22, %23 : vector<16x16xf32>
    %25 = arith.addf %24, %15 : vector<16x16xf32>
    %cst_14 = arith.constant dense<0xFF800000> : vector<16xf32>
    %26 = vector.multi_reduction <maximumf>, %25, %cst_14 [1] : vector<16x16xf32> to vector<16xf32>
    %27 = vector.shape_cast %26 : vector<16xf32> to vector<16x1xf32>
    %28 = vector.broadcast %27 : vector<16x1xf32> to vector<16x16xf32>
    %29 = arith.subf %25, %28 : vector<16x16xf32>
    %30 = math.exp %29 : vector<16x16xf32>
    %cst_15 = arith.constant dense<0.000000e+00> : vector<16xf32>
    %31 = vector.multi_reduction <add>, %30, %cst_15 [1] : vector<16x16xf32> to vector<16xf32>
    %32 = vector.shape_cast %31 : vector<16xf32> to vector<16x1xf32>
    %33 = tpu.reciprocal %32 {approx = true} : vector<16x1xf32> -> vector<16x1xf32>
    %34 = vector.broadcast %33 : vector<16x1xf32> to vector<16x16xf32>
    %35 = arith.mulf %30, %34 : vector<16x16xf32>
    %36 = arith.truncf %35 : vector<16x16xf32> to vector<16x16xbf16>
    %cst_16 = arith.constant dense<0.000000e+00> : vector<16x8xf32>
    %37 = tpu.matmul %36, %21, %cst_16 {dimension_numbers = #tpu.dot_dimension_numbers<[1], [0], [0], [1], [0, 0, 1, 1], [], []>} : vector<16x16xbf16>, vector<16x8xbf16>, vector<16x8xf32> -> vector<16x8xf32>
    %38 = vector.extract_strided_slice %13 {offsets = [0, 8], sizes = [16, 8], strides = [1, 1]} : vector<16x128xf32> to vector<16x8xf32>
    %39 = arith.truncf %38 : vector<16x8xf32> to vector<16x8xbf16>
    %40 = vector.extract_strided_slice %13 {offsets = [0, 40], sizes = [16, 8], strides = [1, 1]} : vector<16x128xf32> to vector<16x8xf32>
    %41 = arith.truncf %40 : vector<16x8xf32> to vector<16x8xbf16>
    %42 = vector.extract_strided_slice %13 {offsets = [0, 72], sizes = [16, 8], strides = [1, 1]} : vector<16x128xf32> to vector<16x8xf32>
    %43 = arith.truncf %42 : vector<16x8xf32> to vector<16x8xbf16>
    %cst_17 = arith.constant dense<0.000000e+00> : vector<16x16xf32>
    %44 = tpu.matmul %39, %41, %cst_17 {dimension_numbers = #tpu.dot_dimension_numbers<[1], [1], [0], [0], [0, 0, 1, 0], [], []>} : vector<16x8xbf16>, vector<16x8xbf16>, vector<16x16xf32> -> vector<16x16xf32>
    %cst_18 = arith.constant 0.353553385 : f32
    %45 = vector.broadcast %cst_18 : f32 to vector<16x16xf32>
    %46 = arith.mulf %44, %45 : vector<16x16xf32>
    %47 = arith.addf %46, %15 : vector<16x16xf32>
    %cst_19 = arith.constant dense<0xFF800000> : vector<16xf32>
    %48 = vector.multi_reduction <maximumf>, %47, %cst_19 [1] : vector<16x16xf32> to vector<16xf32>
    %49 = vector.shape_cast %48 : vector<16xf32> to vector<16x1xf32>
    %50 = vector.broadcast %49 : vector<16x1xf32> to vector<16x16xf32>
    %51 = arith.subf %47, %50 : vector<16x16xf32>
    %52 = math.exp %51 : vector<16x16xf32>
    %cst_20 = arith.constant dense<0.000000e+00> : vector<16xf32>
    %53 = vector.multi_reduction <add>, %52, %cst_20 [1] : vector<16x16xf32> to vector<16xf32>
    %54 = vector.shape_cast %53 : vector<16xf32> to vector<16x1xf32>
    %55 = tpu.reciprocal %54 {approx = true} : vector<16x1xf32> -> vector<16x1xf32>
    %56 = vector.broadcast %55 : vector<16x1xf32> to vector<16x16xf32>
    %57 = arith.mulf %52, %56 : vector<16x16xf32>
    %58 = arith.truncf %57 : vector<16x16xf32> to vector<16x16xbf16>
    %cst_21 = arith.constant dense<0.000000e+00> : vector<16x8xf32>
    %59 = tpu.matmul %58, %43, %cst_21 {dimension_numbers = #tpu.dot_dimension_numbers<[1], [0], [0], [1], [0, 0, 1, 1], [], []>} : vector<16x16xbf16>, vector<16x8xbf16>, vector<16x8xf32> -> vector<16x8xf32>
    %60 = vector.extract_strided_slice %13 {offsets = [0, 16], sizes = [16, 8], strides = [1, 1]} : vector<16x128xf32> to vector<16x8xf32>
    %61 = arith.truncf %60 : vector<16x8xf32> to vector<16x8xbf16>
    %62 = vector.extract_strided_slice %13 {offsets = [0, 48], sizes = [16, 8], strides = [1, 1]} : vector<16x128xf32> to vector<16x8xf32>
    %63 = arith.truncf %62 : vector<16x8xf32> to vector<16x8xbf16>
    %64 = vector.extract_strided_slice %13 {offsets = [0, 80], sizes = [16, 8], strides = [1, 1]} : vector<16x128xf32> to vector<16x8xf32>
    %65 = arith.truncf %64 : vector<16x8xf32> to vector<16x8xbf16>
    %cst_22 = arith.constant dense<0.000000e+00> : vector<16x16xf32>
    %66 = tpu.matmul %61, %63, %cst_22 {dimension_numbers = #tpu.dot_dimension_numbers<[1], [1], [0], [0], [0, 0, 1, 0], [], []>} : vector<16x8xbf16>, vector<16x8xbf16>, vector<16x16xf32> -> vector<16x16xf32>
    %cst_23 = arith.constant 0.353553385 : f32
    %67 = vector.broadcast %cst_23 : f32 to vector<16x16xf32>
    %68 = arith.mulf %66, %67 : vector<16x16xf32>
    %69 = arith.addf %68, %15 : vector<16x16xf32>
    %cst_24 = arith.constant dense<0xFF800000> : vector<16xf32>
    %70 = vector.multi_reduction <maximumf>, %69, %cst_24 [1] : vector<16x16xf32> to vector<16xf32>
    %71 = vector.shape_cast %70 : vector<16xf32> to vector<16x1xf32>
    %72 = vector.broadcast %71 : vector<16x1xf32> to vector<16x16xf32>
    %73 = arith.subf %69, %72 : vector<16x16xf32>
    %74 = math.exp %73 : vector<16x16xf32>
    %cst_25 = arith.constant dense<0.000000e+00> : vector<16xf32>
    %75 = vector.multi_reduction <add>, %74, %cst_25 [1] : vector<16x16xf32> to vector<16xf32>
    %76 = vector.shape_cast %75 : vector<16xf32> to vector<16x1xf32>
    %77 = tpu.reciprocal %76 {approx = true} : vector<16x1xf32> -> vector<16x1xf32>
    %78 = vector.broadcast %77 : vector<16x1xf32> to vector<16x16xf32>
    %79 = arith.mulf %74, %78 : vector<16x16xf32>
    %80 = arith.truncf %79 : vector<16x16xf32> to vector<16x16xbf16>
    %cst_26 = arith.constant dense<0.000000e+00> : vector<16x8xf32>
    %81 = tpu.matmul %80, %65, %cst_26 {dimension_numbers = #tpu.dot_dimension_numbers<[1], [0], [0], [1], [0, 0, 1, 1], [], []>} : vector<16x16xbf16>, vector<16x8xbf16>, vector<16x8xf32> -> vector<16x8xf32>
    %82 = vector.extract_strided_slice %13 {offsets = [0, 24], sizes = [16, 8], strides = [1, 1]} : vector<16x128xf32> to vector<16x8xf32>
    %83 = arith.truncf %82 : vector<16x8xf32> to vector<16x8xbf16>
    %84 = vector.extract_strided_slice %13 {offsets = [0, 56], sizes = [16, 8], strides = [1, 1]} : vector<16x128xf32> to vector<16x8xf32>
    %85 = arith.truncf %84 : vector<16x8xf32> to vector<16x8xbf16>
    %86 = vector.extract_strided_slice %13 {offsets = [0, 88], sizes = [16, 8], strides = [1, 1]} : vector<16x128xf32> to vector<16x8xf32>
    %87 = arith.truncf %86 : vector<16x8xf32> to vector<16x8xbf16>
    %cst_27 = arith.constant dense<0.000000e+00> : vector<16x16xf32>
    %88 = tpu.matmul %83, %85, %cst_27 {dimension_numbers = #tpu.dot_dimension_numbers<[1], [1], [0], [0], [0, 0, 1, 0], [], []>} : vector<16x8xbf16>, vector<16x8xbf16>, vector<16x16xf32> -> vector<16x16xf32>
    %cst_28 = arith.constant 0.353553385 : f32
    %89 = vector.broadcast %cst_28 : f32 to vector<16x16xf32>
    %90 = arith.mulf %88, %89 : vector<16x16xf32>
    %91 = arith.addf %90, %15 : vector<16x16xf32>
    %cst_29 = arith.constant dense<0xFF800000> : vector<16xf32>
    %92 = vector.multi_reduction <maximumf>, %91, %cst_29 [1] : vector<16x16xf32> to vector<16xf32>
    %93 = vector.shape_cast %92 : vector<16xf32> to vector<16x1xf32>
    %94 = vector.broadcast %93 : vector<16x1xf32> to vector<16x16xf32>
    %95 = arith.subf %91, %94 : vector<16x16xf32>
    %96 = math.exp %95 : vector<16x16xf32>
    %cst_30 = arith.constant dense<0.000000e+00> : vector<16xf32>
    %97 = vector.multi_reduction <add>, %96, %cst_30 [1] : vector<16x16xf32> to vector<16xf32>
    %98 = vector.shape_cast %97 : vector<16xf32> to vector<16x1xf32>
    %99 = tpu.reciprocal %98 {approx = true} : vector<16x1xf32> -> vector<16x1xf32>
    %100 = vector.broadcast %99 : vector<16x1xf32> to vector<16x16xf32>
    %101 = arith.mulf %96, %100 : vector<16x16xf32>
    %102 = arith.truncf %101 : vector<16x16xf32> to vector<16x16xbf16>
    %cst_31 = arith.constant dense<0.000000e+00> : vector<16x8xf32>
    %103 = tpu.matmul %102, %87, %cst_31 {dimension_numbers = #tpu.dot_dimension_numbers<[1], [0], [0], [1], [0, 0, 1, 1], [], []>} : vector<16x16xbf16>, vector<16x8xbf16>, vector<16x8xf32> -> vector<16x8xf32>
    %104 = tpu.concatenate %37, %59, %81, %103 in 1 : vector<16x8xf32>, vector<16x8xf32>, vector<16x8xf32>, vector<16x8xf32> -> vector<16x32xf32>
    %105 = arith.truncf %104 : vector<16x32xf32> to vector<16x32xbf16>
    %c0_32 = arith.constant 0 : index
    %c0_33 = arith.constant 0 : index
    %c128 = arith.constant 128 : index
    %106 = vector.load %arg5[%c0_32, %c0_33, %c128] : memref<1x128x512xbf16, #tpu.memory_space<vmem>>, vector<1x32x128xbf16>
    %107 = vector.shape_cast %106 : vector<1x32x128xbf16> to vector<32x128xbf16>
    %cst_34 = arith.constant dense<0.000000e+00> : vector<16x128xf32>
    %108 = tpu.matmul %105, %107, %cst_34 {dimension_numbers = #tpu.dot_dimension_numbers<[1], [0], [0], [1], [0, 0, 1, 1], [], []>} : vector<16x32xbf16>, vector<32x128xbf16>, vector<16x128xf32> -> vector<16x128xf32>
    %109 = vector.extract_strided_slice %2 {offsets = [1, 0], sizes = [1, 128], strides = [1, 1]} : vector<8x128xf32> to vector<1x128xf32>
    %110 = vector.broadcast %109 : vector<1x128xf32> to vector<16x128xf32>
    %111 = arith.addf %108, %110 : vector<16x128xf32>
    %112 = arith.addf %111, %6 : vector<16x128xf32>
    %113 = vector.extract_strided_slice %2 {offsets = [4, 0], sizes = [1, 128], strides = [1, 1]} : vector<8x128xf32> to vector<1x128xf32>
    %114 = vector.extract_strided_slice %2 {offsets = [5, 0], sizes = [1, 128], strides = [1, 1]} : vector<8x128xf32> to vector<1x128xf32>
    %cst_35 = arith.constant dense<0.000000e+00> : vector<16xf32>
    %115 = vector.multi_reduction <add>, %112, %cst_35 [1] : vector<16x128xf32> to vector<16xf32>
    %116 = vector.shape_cast %115 : vector<16xf32> to vector<16x1xf32>
    %cst_36 = arith.constant 3.125000e-02 : f32
    %117 = vector.broadcast %cst_36 : f32 to vector<16x1xf32>
    %118 = arith.mulf %116, %117 : vector<16x1xf32>
    %119 = arith.mulf %112, %112 : vector<16x128xf32>
    %cst_37 = arith.constant dense<0.000000e+00> : vector<16xf32>
    %120 = vector.multi_reduction <add>, %119, %cst_37 [1] : vector<16x128xf32> to vector<16xf32>
    %121 = vector.shape_cast %120 : vector<16xf32> to vector<16x1xf32>
    %cst_38 = arith.constant 3.125000e-02 : f32
    %122 = vector.broadcast %cst_38 : f32 to vector<16x1xf32>
    %123 = arith.mulf %121, %122 : vector<16x1xf32>
    %124 = arith.mulf %118, %118 : vector<16x1xf32>
    %125 = arith.subf %123, %124 : vector<16x1xf32>
    %126 = vector.broadcast %118 : vector<16x1xf32> to vector<16x128xf32>
    %127 = arith.subf %112, %126 : vector<16x128xf32>
    %cst_39 = arith.constant 9.99999996E-13 : f32
    %128 = vector.broadcast %cst_39 : f32 to vector<16x1xf32>
    %129 = arith.addf %125, %128 : vector<16x1xf32>
    %130 = math.rsqrt %129 : vector<16x1xf32>
    %131 = vector.broadcast %130 : vector<16x1xf32> to vector<16x128xf32>
    %132 = arith.mulf %127, %131 : vector<16x128xf32>
    %133 = vector.broadcast %113 : vector<1x128xf32> to vector<16x128xf32>
    %134 = arith.mulf %132, %133 : vector<16x128xf32>
    %135 = vector.broadcast %114 : vector<1x128xf32> to vector<16x128xf32>
    %136 = arith.addf %134, %135 : vector<16x128xf32>
    %137 = arith.truncf %136 : vector<16x128xf32> to vector<16x128xbf16>
    %c0_40 = arith.constant 0 : index
    %c0_41 = arith.constant 0 : index
    %c256 = arith.constant 256 : index
    %138 = vector.load %arg5[%c0_40, %c0_41, %c256] : memref<1x128x512xbf16, #tpu.memory_space<vmem>>, vector<1x128x128xbf16>
    %139 = vector.shape_cast %138 : vector<1x128x128xbf16> to vector<128x128xbf16>
    %cst_42 = arith.constant dense<0.000000e+00> : vector<16x128xf32>
    %140 = tpu.matmul %137, %139, %cst_42 {dimension_numbers = #tpu.dot_dimension_numbers<[1], [0], [0], [1], [0, 0, 1, 1], [], []>} : vector<16x128xbf16>, vector<128x128xbf16>, vector<16x128xf32> -> vector<16x128xf32>
    %141 = vector.extract_strided_slice %2 {offsets = [2, 0], sizes = [1, 128], strides = [1, 1]} : vector<8x128xf32> to vector<1x128xf32>
    %142 = vector.broadcast %141 : vector<1x128xf32> to vector<16x128xf32>
    %143 = arith.addf %140, %142 : vector<16x128xf32>
    %cst_43 = arith.constant 5.000000e-01 : f32
    %144 = vector.broadcast %cst_43 : f32 to vector<16x128xf32>
    %145 = arith.mulf %144, %143 : vector<16x128xf32>
    %cst_44 = arith.constant 0.707106769 : f32
    %146 = vector.broadcast %cst_44 : f32 to vector<16x128xf32>
    %147 = arith.mulf %143, %146 : vector<16x128xf32>
    %148 = math.erf %147 : vector<16x128xf32>
    %cst_45 = arith.constant 1.000000e+00 : f32
    %149 = vector.broadcast %cst_45 : f32 to vector<16x128xf32>
    %150 = arith.addf %149, %148 : vector<16x128xf32>
    %151 = arith.mulf %145, %150 : vector<16x128xf32>
    %152 = arith.truncf %151 : vector<16x128xf32> to vector<16x128xbf16>
    %c0_46 = arith.constant 0 : index
    %c0_47 = arith.constant 0 : index
    %c384 = arith.constant 384 : index
    %153 = vector.load %arg5[%c0_46, %c0_47, %c384] : memref<1x128x512xbf16, #tpu.memory_space<vmem>>, vector<1x128x128xbf16>
    %154 = vector.shape_cast %153 : vector<1x128x128xbf16> to vector<128x128xbf16>
    %cst_48 = arith.constant dense<0.000000e+00> : vector<16x128xf32>
    %155 = tpu.matmul %152, %154, %cst_48 {dimension_numbers = #tpu.dot_dimension_numbers<[1], [0], [0], [1], [0, 0, 1, 1], [], []>} : vector<16x128xbf16>, vector<128x128xbf16>, vector<16x128xf32> -> vector<16x128xf32>
    %156 = vector.extract_strided_slice %2 {offsets = [3, 0], sizes = [1, 128], strides = [1, 1]} : vector<8x128xf32> to vector<1x128xf32>
    %157 = vector.broadcast %156 : vector<1x128xf32> to vector<16x128xf32>
    %158 = arith.addf %155, %157 : vector<16x128xf32>
    %159 = arith.addf %158, %136 : vector<16x128xf32>
    %160 = vector.extract_strided_slice %2 {offsets = [6, 0], sizes = [1, 128], strides = [1, 1]} : vector<8x128xf32> to vector<1x128xf32>
    %161 = vector.extract_strided_slice %2 {offsets = [7, 0], sizes = [1, 128], strides = [1, 1]} : vector<8x128xf32> to vector<1x128xf32>
    %cst_49 = arith.constant dense<0.000000e+00> : vector<16xf32>
    %162 = vector.multi_reduction <add>, %159, %cst_49 [1] : vector<16x128xf32> to vector<16xf32>
    %163 = vector.shape_cast %162 : vector<16xf32> to vector<16x1xf32>
    %cst_50 = arith.constant 3.125000e-02 : f32
    %164 = vector.broadcast %cst_50 : f32 to vector<16x1xf32>
    %165 = arith.mulf %163, %164 : vector<16x1xf32>
    %166 = arith.mulf %159, %159 : vector<16x128xf32>
    %cst_51 = arith.constant dense<0.000000e+00> : vector<16xf32>
    %167 = vector.multi_reduction <add>, %166, %cst_51 [1] : vector<16x128xf32> to vector<16xf32>
    %168 = vector.shape_cast %167 : vector<16xf32> to vector<16x1xf32>
    %cst_52 = arith.constant 3.125000e-02 : f32
    %169 = vector.broadcast %cst_52 : f32 to vector<16x1xf32>
    %170 = arith.mulf %168, %169 : vector<16x1xf32>
    %171 = arith.mulf %165, %165 : vector<16x1xf32>
    %172 = arith.subf %170, %171 : vector<16x1xf32>
    %173 = vector.broadcast %165 : vector<16x1xf32> to vector<16x128xf32>
    %174 = arith.subf %159, %173 : vector<16x128xf32>
    %cst_53 = arith.constant 9.99999996E-13 : f32
    %175 = vector.broadcast %cst_53 : f32 to vector<16x1xf32>
    %176 = arith.addf %172, %175 : vector<16x1xf32>
    %177 = math.rsqrt %176 : vector<16x1xf32>
    %178 = vector.broadcast %177 : vector<16x1xf32> to vector<16x128xf32>
    %179 = arith.mulf %174, %178 : vector<16x128xf32>
    %180 = vector.broadcast %160 : vector<1x128xf32> to vector<16x128xf32>
    %181 = arith.mulf %179, %180 : vector<16x128xf32>
    %182 = vector.broadcast %161 : vector<1x128xf32> to vector<16x128xf32>
    %183 = arith.addf %181, %182 : vector<16x128xf32>
    %c0_54 = arith.constant 0 : index
    %c0_55 = arith.constant 0 : index
    %184 = vector.load %arg7[%c0_54, %c0_55] : memref<16x128xf32, #tpu.memory_space<vmem>>, vector<16x128xf32>
    tpu.vector_store %arg7[%c0_54, %c0_55], %183 {strides = array<i32>} : memref<16x128xf32, #tpu.memory_space<vmem>>, vector<16x128xf32>,
    %c1_i32 = arith.constant 1 : i32
    %185 = arith.cmpi eq, %arg0, %c1_i32 : i32
    %186 = arith.extui %185 : i1 to i32
    %c0_i32_56 = arith.constant 0 : i32
    %187 = arith.cmpi ne, %186, %c0_i32_56 : i32
    scf.if %187 {
      %188 = vector.extract_strided_slice %183 {offsets = [0, 0], sizes = [1, 128], strides = [1, 1]} : vector<16x128xf32> to vector<1x128xf32>
      %189 = vector.extract_strided_slice %183 {offsets = [8, 0], sizes = [1, 128], strides = [1, 1]} : vector<16x128xf32> to vector<1x128xf32>
      %cst_57 = arith.constant 0.000000e+00 : f32
      %190 = vector.broadcast %cst_57 : f32 to vector<6x128xf32>
      %191 = tpu.concatenate %188, %189, %190 in 0 : vector<1x128xf32>, vector<1x128xf32>, vector<6x128xf32> -> vector<8x128xf32>
      %192 = arith.truncf %191 : vector<8x128xf32> to vector<8x128xbf16>
      %c0_58 = arith.constant 0 : index
      %c0_59 = arith.constant 0 : index
      %193 = vector.load %arg4[%c0_58, %c0_59] : memref<128x256xbf16, #tpu.memory_space<vmem>>, vector<128x128xbf16>
      %cst_60 = arith.constant dense<0.000000e+00> : vector<8x128xf32>
      %194 = tpu.matmul %192, %193, %cst_60 {dimension_numbers = #tpu.dot_dimension_numbers<[1], [0], [0], [1], [0, 0, 1, 1], [], []>} : vector<8x128xbf16>, vector<128x128xbf16>, vector<8x128xf32> -> vector<8x128xf32>
      %195 = vector.extract_strided_slice %0 {offsets = [2, 0], sizes = [1, 128], strides = [1, 1]} : vector<8x128xf32> to vector<1x128xf32>
      %196 = vector.broadcast %195 : vector<1x128xf32> to vector<8x128xf32>
      %197 = arith.addf %194, %196 : vector<8x128xf32>
      %198 = math.tanh %197 : vector<8x128xf32>
      %199 = arith.truncf %198 : vector<8x128xf32> to vector<8x128xbf16>
      %c0_61 = arith.constant 0 : index
      %c128_62 = arith.constant 128 : index
      %200 = vector.load %arg4[%c0_61, %c128_62] : memref<128x256xbf16, #tpu.memory_space<vmem>>, vector<128x128xbf16>
      %cst_63 = arith.constant dense<0.000000e+00> : vector<8x128xf32>
      %201 = tpu.matmul %199, %200, %cst_63 {dimension_numbers = #tpu.dot_dimension_numbers<[1], [0], [0], [1], [0, 0, 1, 1], [], []>} : vector<8x128xbf16>, vector<128x128xbf16>, vector<8x128xf32> -> vector<8x128xf32>
      %202 = vector.extract_strided_slice %0 {offsets = [3, 0], sizes = [1, 128], strides = [1, 1]} : vector<8x128xf32> to vector<1x128xf32>
      %203 = vector.broadcast %202 : vector<1x128xf32> to vector<8x128xf32>
      %204 = arith.addf %201, %203 : vector<8x128xf32>
      %c0_64 = arith.constant 0 : index
      %c0_65 = arith.constant 0 : index
      %205 = vector.load %arg8[%c0_64, %c0_65] : memref<8x128xf32, #tpu.memory_space<vmem>>, vector<8x128xf32>
      tpu.vector_store %arg8[%c0_64, %c0_65], %204 {strides = array<i32>} : memref<8x128xf32, #tpu.memory_space<vmem>>, vector<8x128xf32>,
    } else {
    }
    return
  }
  func.func @transform_0(%arg0: i32) -> (i32, i32) {
    %c0_i32 = arith.constant 0 : i32
    %c0_i32_0 = arith.constant 0 : i32
    %c0_i32_1 = arith.constant 0 : i32
    return %c0_i32, %c0_i32_0 : i32, i32
  }
  func.func @transform_1(%arg0: i32) -> (i32, i32) {
    %c0_i32 = arith.constant 0 : i32
    %c0_i32_0 = arith.constant 0 : i32
    %c0_i32_1 = arith.constant 0 : i32
    return %c0_i32, %c0_i32_0 : i32, i32
  }
  func.func @transform_2(%arg0: i32) -> (i32, i32) {
    %c0_i32 = arith.constant 0 : i32
    %c0_i32_0 = arith.constant 0 : i32
    %c0_i32_1 = arith.constant 0 : i32
    return %c0_i32, %c0_i32_0 : i32, i32
  }
  func.func @transform_3(%arg0: i32) -> (i32, i32) {
    %c0_i32 = arith.constant 0 : i32
    %c0_i32_0 = arith.constant 0 : i32
    %c0_i32_1 = arith.constant 0 : i32
    return %c0_i32, %c0_i32_0 : i32, i32
  }
  func.func @transform_4(%arg0: i32) -> (i32, i32, i32) {
    %c0_i32 = arith.constant 0 : i32
    %c0_i32_0 = arith.constant 0 : i32
    %c0_i32_1 = arith.constant 0 : i32
    return %arg0, %c0_i32, %c0_i32_0 : i32, i32, i32
  }
  func.func @transform_5(%arg0: i32) -> (i32, i32, i32) {
    %c0_i32 = arith.constant 0 : i32
    %c0_i32_0 = arith.constant 0 : i32
    %c0_i32_1 = arith.constant 0 : i32
    return %arg0, %c0_i32, %c0_i32_0 : i32, i32, i32
  }
  func.func @transform_6(%arg0: i32) -> (i32, i32) {
    %c0_i32 = arith.constant 0 : i32
    %c0_i32_0 = arith.constant 0 : i32
    %c0_i32_1 = arith.constant 0 : i32
    return %c0_i32, %c0_i32_0 : i32, i32
  }
  func.func @transform_7(%arg0: i32) -> (i32, i32) {
    %c0_i32 = arith.constant 0 : i32
    %c0_i32_0 = arith.constant 0 : i32
    %c0_i32_1 = arith.constant 0 : i32
    return %c0_i32, %c0_i32_0 : i32, i32
  }
}

</mosaic_0001>

<bundles_post_ra>
// kernel: bert_classifier_forward.1
= control target key start
LH: loop header
LB: loop body
LE: loop exit
PB: predicated region body
PF: predicated region fallthrough
CT: control target
= control target key end

     0   :  { %13 = vsyncpa [#allocation3], 0  ;;  %s2178_s24 = smov 0   ;;  %s2484_s0 = inlined_call_operand.vmem [shape: f32[16,128], index: 0, kind: input, shape index: {}]   ;;  %s2485_s1 = inlined_call_operand.vmem [shape: f32[16,128], index: 1, kind: input, shape index: {}]   ;;  %s2486_s2 = inlined_call_operand.vmem [shape: f32[8,128], index: 2, kind: input, shape index: {}]   ;;  %s2487_s3 = inlined_call_operand.vmem [shape: bf16[128,256], index: 3, kind: input, shape index: {}]   ;;  %s2488_s4 = inlined_call_operand.vmem [shape: bf16[2,128,512], index: 4, kind: input, shape index: {}]   ;;  %s2489_s5 = inlined_call_operand.vmem [shape: f32[2,8,128], index: 5, kind: input, shape index: {}]   ;;  %s2490_s6 = inlined_call_operand.hbm [shape: f32[16,128], index: 6, kind: output, shape index: {0}]   ;;  %s2491_s7 = inlined_call_operand.vmem [shape: f32[8,128], index: 7, kind: output, shape index: {1}]  }
   0x1 LB: > { %s2184_s25 = sadd.s32 4294967295, %s2116_s24   ;;  %p1654_p0 = scmp.ge.s32.totalorder %s2116_s24, 1  ;;  %s2116_s24 = sphi %s2178_s24, %s19_s24  }
   0x2   : > { %p240_p1 = scmp.lt.s32.totalorder %s2116_s24, 3 }
   0x4   : > { %p241_p2 = pnand %p1654_p0, %p240_p1 }
   0x5   : > { %p271_p3 = scmp.lt.s32.totalorder (!%p241_p2), %s2184_s25, 1  ;;  %v2192_v0 = vld [vmem:[%s2486_s2] sm:$0xff] (!%p241_p2)  ;;  %p1658_p4 = scmp.ne.s32.totalorder (!%p241_p2), %s2184_s25, 0 }
   0x6   : > { %244 = sbr.rel (%p241_p2) target bundleno = 3488 (0xda0), region = 44 }
   0xd   : > { %s272_s28 = scalar_select %p271_p3, %s2184_s25, 1 }
   0xe   : > { %286 = sbr.rel (%p1658_p4) target bundleno = 187 (0xbb), region = 48  ;;  %v287_v2 = vld [vmem:[%s2484_s0] sm:$0xff] (!%p1658_p4)  ;;  %v288_v3 = vld [vmem:[%s2484_s0 + $0x8] sm:$0xff] (!%p1658_p4)  ;;  %v315_v14 = vlaneseq (!%p1658_p4) }
   0xf   : > { %s1718_s29 = sshll.u32 %s272_s28, 8  ;;  %s1657_s30 = sshll.u32 %s272_s28, 3  ;;  %289 = vadd.xlane.f32.xlu0 (!%p1658_p4), %v287_v2  ;;  %v295_v4 = vmul.f32 (!%p1658_p4), %v287_v2, %v287_v2  ;;  %v296_v5 = vmul.f32 (!%p1658_p4), %v288_v3, %v288_v3 }
  0x10   : > { %s2198_s10 = scalar_lea.vmem %s2488_s4, %s1718_s29  ;;  %s279_s13 = scalar_lea.vmem %s2489_s5, %s1657_s30  ;;  %v316_v20 = vshrl.u32 (!%p1658_p4), %v315_v14, 7 }
  0x11   : > { %v2203_v1 = vld [vmem:[%s279_s13] sm:$0xff]  ;;  %297 = vadd.xlane.f32.xlu1 (!%p1658_p4), %v295_v4 }
  0x12   : > { %v317_v22 = vsub.s32 (!%p1658_p4), 0, %v316_v20  ;;  %v323_v23 = vsub.s32 (!%p1658_p4), 1, %v316_v20 }
  0x13   : > { %291 = vadd.xlane.f32.xlu0 (!%p1658_p4), %v288_v3 }
  0x14   : > { %v318_v25 = vrot.slane (!%p1658_p4), %v2192_v0, %v317_v22  ;;  %v324_v27 = vrot.slane (!%p1658_p4), %v2192_v0, %v323_v23 }
  0x15   : > { %299 = vadd.xlane.f32.xlu1 %v296_v5 }
  0x9c   : > { %v290_v6 = vpop.xlane.xlu0 %289 }
  0x9d   : > { %v293_v7 = vmul.f32 0.03125, %v290_v6 }
  0x9e   : > { %v298_v8 = vpop.xlane.xlu1 %297 }
  0x9f   : > { %v303_v9 = vmul.f32 %v293_v7, %v293_v7  ;;  %v301_v10 = vmul.f32 0.03125, %v298_v8  ;;  %v307_v24 = vsub.f32 %v287_v2, %v293_v7 }
  0xa0   : > { %v292_v11 = vpop.xlane.xlu0 %291 }
  0xa1   : > { %v305_v12 = vsub.f32 %v301_v10, %v303_v9  ;;  %v294_v13 = vmul.f32 0.03125, %v292_v11 }
  0xa2   : > { %v300_v15 = vpop.xlane.xlu1 %299 }
  0xa3   : > { %v309_v16 = vadd.f32 1e-12, %v305_v12  ;;  %v304_v17 = vmul.f32 %v294_v13, %v294_v13  ;;  %v302_v18 = vmul.f32 0.03125, %v300_v15  ;;  %v308_v30 = vsub.f32 %v288_v3, %v294_v13 }
  0xa5   : > { %1973 = vrsqrt.f32 %v309_v16  ;;  %v306_v19 = vsub.f32 %v302_v18, %v304_v17 }
  0xa7   : > { %v310_v21 = vadd.f32 1e-12, %v306_v19 }
  0xa9   : > { %1975 = vrsqrt.f32 %v310_v21 }
  0xaf   : > { %v1974_v26 = vpop.eup %1973 }
  0xb0   : > { %v313_v28 = vmul.f32 %v1974_v26, %v307_v24 }
  0xb2   : > { %v319_v29 = vmul.f32 %v318_v25, %v313_v28 }
  0xb3   : > { %v1976_v31 = vpop.eup %1975 }
  0xb4   : > { %v325_v32 = vadd.f32 %v324_v27, %v319_v29  ;;  %v314_v33 = vmul.f32 %v1976_v31, %v308_v30 }
  0xb6   : > { %327 = vst [vmem:[#allocation2] sm:$0xff] %v325_v32  ;;  %v320_v34 = vmul.f32 %v318_v25, %v314_v33 }
  0xb8   : > { %v326_v35 = vadd.f32 %v324_v27, %v320_v34 }
  0xba   : > { %328 = vst [vmem:[#allocation2 + $0x8] sm:$0xff] %v326_v35 }
  0xbb PF: > { %v2118_v36 = vmov 0.0   ;;  %v1992_v37 = vld [vmem:[%s2198_s10] ss:$16 sps:$4 sm:$0xff]   ;;  %vm2119_vm0 = vmmov 0   ;;  %v348_v48 = vlaneseq  ;;  %s2120_s18 = smov 96   ;;  %vm447_vm1 = vcmask 64512  }
  0xbc   : > { %1783 = vmatprep.subr.bf16.mxu0 %v2118_v36  ;;  %1799 = vmatprep.mubr.msk.bf16.mxu0 %vm2119_vm0, %v2118_v36  ;;  %v1993_v38 = vld [vmem:[%s2198_s10 + $0x20] ss:$16 sps:$4 sm:$0xff]   ;;  %vm499_vm2 = vcmask 130048   ;;  %v2265_v4 = vld [vmem:[%s2485_s1 + $0x8] sm:$0xff]  ;;  %s2121_s23 = smov 64   ;;  %s2122_s26 = smov 80  }
  0xbd   : > { %1803 = vmatprep.subr.bf16.mxu1 %v2118_v36  ;;  %1805 = vmatprep.mubr.msk.bf16.mxu1 %vm2119_vm0, %v2118_v36  ;;  %v1994_v39 = vld [vmem:[%s2198_s10 + $0x40] ss:$16 sps:$4 sm:$0xff]   ;;  %v2244_v49 = vshrl.u32 %v348_v48, 7  ;;  %s2123_s27 = smov 88   ;;  %s2124_s28 = smov 120   ;;  %vm973_vm3 = vcmask 195584  }
  0xbe   : > { %1784 = vmatpush3.bf16.msra.mxu0 %v1992_v37  ;;  %v1995_v40 = vld [vmem:[%s2198_s10 + $0x60] ss:$16 sps:$4 sm:$0xff]   ;;  %s2125_s29 = smov 112   ;;  %s2126_s30 = smov 72   ;;  %vm997_vm4 = vcmask 261120  }
  0xbf   : > { %1785 = vmatprep.subr.bf16.mxu0 %v2118_v36  ;;  %v1996_v41 = vld [vmem:[%s2198_s10 + $0x80] ss:$16 sps:$4 sm:$0xff]   ;;  %v350_v50 = vsub.s32 0, %v2244_v49  ;;  %s2127_s8 = smov 104   ;;  %s2128_s9 = smov 56  }
  0xc0   : > { %v1997_v42 = vld [vmem:[%s2198_s10 + $0xa0] ss:$16 sps:$4 sm:$0xff]   ;;  %s2129_s11 = smov 40   ;;  %s2130_s12 = smov 48  }
  0xc1   : > { %v1998_v43 = vld [vmem:[%s2198_s10 + $0xc0] ss:$16 sps:$4 sm:$0xff]   ;;  %v2236_v46 = vld [vmem:[#allocation2 + $0x8] sm:$0xff]  ;;  %v351_v51 = vrot.slane %v2203_v1, %v350_v50  ;;  %s2131_s13 = smov 8   ;;  %s2132_s14 = smov 16  }
  0xc2   : > { %1786 = vmatpush3.bf16.msra.mxu0 %v1993_v38  ;;  %v1999_v44 = vld [vmem:[%s2198_s10 + $0xe0] ss:$16 sps:$4 sm:$0xff]   ;;  %s2133_s15 = smov 24   ;;  %p1694_p5 = scmp.ne.s32.totalorder %s2184_s25, 1 }
  0xc3   : > { %1787 = vmatprep.subr.bf16.mxu0 %v2118_v36  ;;  %v2234_v45 = vld [vmem:[#allocation2] sm:$0xff]  ;;  %vm2135_vm5 = vmmov (!%p1694_p5), 0   ;;  %vm1361_vm6 = vcmask (!%p1694_p5), 1040384   ;;  %vm1363_vm7 = vcmask (!%p1694_p5), 1041408  }
  0xc4   : > { %v331_v47 = vpack.c.bf16 %v2236_v46, %v2234_v45  ;;  %v2260_v62 = vld [vmem:[%s2485_s1] sm:$0xff]  ;;  %vm1703_vm8 = vmpackc.low (!%p1694_p5), %vm1363_vm7, %vm1363_vm7 }
  0xc6   : > { %1788 = vmatpush3.bf16.msra.mxu0 %v1994_v39 }
  0xc7   : > { %1789 = vmatprep.subr.bf16.mxu0 %v2118_v36 }
  0xca   : > { %1790 = vmatpush3.bf16.msra.mxu0 %v1995_v40 }
  0xcb   : > { %1791 = vmatprep.subr.bf16.mxu0 %v2118_v36 }
  0xce   : > { %1792 = vmatpush3.bf16.msra.mxu0 %v1996_v41 }
  0xcf   : > { %1793 = vmatprep.subr.bf16.mxu0 %v2118_v36 }
  0xd2   : > { %1794 = vmatpush3.bf16.msra.mxu0 %v1997_v42 }
  0xd3   : > { %1795 = vmatprep.subr.bf16.mxu0 %v2118_v36 }
  0xd6   : > { %1796 = vmatpush3.bf16.msra.mxu0 %v1998_v43 }
  0xd7   : > { %1797 = vmatprep.subr.bf16.mxu0 %v2118_v36 }
  0xda   : > { %1798 = vmatpush3.bf16.msra.mxu0 %v1999_v44 }
  0xdb   : > { %1827 = vmatprep.subr.bf16.mxu0 %v2118_v36 }
  0xdd   : > { %1800 = vmatmul.mubr.bf16.vlgmr.msra.gmra.mrb[0].mxu0 %v331_v47 }
  0xde   : > { %1829 = vmatprep.mubr.msk.bf16.mxu0 %vm2119_vm0, %v2118_v36 }
 0x1b0   : > { %v434_v52 = vpop.f32.mrb[0].mxu0 }
 0x1b1   : > { %v1801_v53 = vpop.f32.mrb[1].mxu0  ;;  %v435_v55 = vadd.f32 %v434_v52, %v351_v51 }
 0x1b2   : > { %v437_v54 = vpop.f32.mrb[2].mxu0 }
 0x1b3   : > { %v438_v56 = vadd.f32 %v437_v54, %v351_v51  ;;  %v1802_v57 = vpop.f32.mrb[3].mxu0 }
 0x1b5   : > { %v2248_v58 = vpack.c.bf16 %v438_v56, %v435_v55 }
 0x1b7   : > { %445 = vrot.lane.b32.xlu0 %v2248_v58, %s2120_s18 }
 0x229   : > { %v446_v59 = vpop.permute.xlu0 %445 }
 0x22a   : > { %v452_v60 = vsel %vm447_vm1, %v446_v59, 0 }
 0x22b   : > { %1804 = vmatpush3.bf16.xpose.msra.mxu1 %v452_v60 }
 0x22c   : > { %1809 = vmatprep.subr.bf16.mxu1 %v2118_v36 }
 0x232   : > { %1806 = vmatmul.mubr.msk.bf16.vlgmr.msra.gmra.mrb[0].mxu1 %vm447_vm1, %v2248_v58 }
 0x233   : > { %1811 = vmatprep.mubr.msk.bf16.mxu1 %vm2119_vm0, %v2118_v36 }
 0x305   : > { %v488_v61 = vpop.f32.mrb[0].mxu1 }
 0x306   : > { %v495_v63 = vmul.f32 0.35355338, %v488_v61  ;;  %v1807_v2 = vpop.f32.mrb[1].mxu1 }
 0x307   : > { %v491_v3 = vpop.f32.mrb[2].mxu1 }
 0x308   : > { %v496_v5 = vmul.f32 0.35355338, %v491_v3  ;;  %v1808_v6 = vpop.f32.mrb[3].mxu1  ;;  %v497_v7 = vadd.f32 %v495_v63, %v2260_v62 }
 0x30a   : > { %v500_v8 = vsel %vm499_vm2, %v497_v7, -inf  ;;  %v498_v9 = vadd.f32 %v496_v5, %v2265_v4 }
 0x30b   : > { %501 = vmax.xlane.f32.xlu0 %v500_v8 }
 0x30c   : > { %v503_v10 = vsel %vm499_vm2, %v498_v9, -inf }
 0x30d   : > { %504 = vmax.xlane.f32.xlu1 %v503_v10 }
 0x31e   : > { %523 = vrot.lane.b32.xlu1 %v2248_v58, %s2121_s23 }
 0x321   : > { %697 = vrot.lane.b32.xlu0 %v2248_v58, %s2122_s26 }
 0x398   : > { %v502_v11 = vpop.xlane.xlu0 %501 }
 0x399   : > { %v506_v12 = vsub.f32 %v497_v7, %v502_v11 }
 0x39a   : > { %v505_v13 = vpop.xlane.xlu1 %504 }
 0x39b   : > { %v508_v14 = vmul.f32 1.442695, %v506_v12  ;;  %v507_v15 = vsub.f32 %v498_v9, %v505_v13 }
 0x39c   : > { %v698_v16 = vpop.permute.xlu0 %697 }
 0x39d   : > { %2018 = vpow2.f32 %v508_v14  ;;  %v510_v17 = vmul.f32 1.442695, %v507_v15  ;;  %v703_v18 = vsel %vm447_vm1, %v698_v16, 0 }
 0x39e   : > { %1828 = vmatpush3.bf16.xpose.msra.mxu0 %v703_v18  ;;  %v524_v19 = vpop.permute.xlu1 %523 }
 0x39f   : > { %2020 = vpow2.f32 %v510_v17  ;;  %1810 = vmatpush3.bf16.msra.mxu1 %v524_v19  ;;  %1839 = vmatprep.subr.bf16.mxu0 %v2118_v36 }
 0x3a0   : > { %1815 = vmatprep.subr.bf16.mxu1 %v2118_v36 }
 0x3a7   : > { %v2019_v20 = vpop.eup %2018 }
 0x3a8   : > { %v512_v21 = vsel %vm499_vm2, %v2019_v20, 0.0 }
 0x3a9   : > { %v2021_v22 = vpop.eup %2020  ;;  %513 = vadd.xlane.f32.xlu1 %v512_v21 }
 0x3aa   : > { %v515_v23 = vsel %vm499_vm2, %v2021_v22, 0.0 }
 0x3ad   : > { %516 = vadd.xlane.f32.xlu1 %v515_v23 }
 0x3be   : > { %572 = vrot.lane.b32.xlu1 %v2248_v58, %s2123_s27 }
 0x3c2   : > { %570 = vrot.lane.b32.xlu1 %v2248_v58, %s2124_s28 }
 0x3c6   : > { %695 = vrot.lane.b32.xlu1 %v2248_v58, %s2125_s29 }
 0x3ca   : > { %822 = vrot.lane.b32.xlu1 %v2248_v58, %s2126_s30 }
 0x3ce   : > { %820 = vrot.lane.b32.xlu1 %v2248_v58, %s2127_s8 }
 0x436   : > { %v514_v24 = vpop.xlane.xlu1 %513 }
 0x437   : > { %2022 = vrcp.f32 %v514_v24 }
 0x43a   : > { %v517_v25 = vpop.xlane.xlu1 %516 }
 0x43b   : > { %2024 = vrcp.f32 %v517_v25 }
 0x43e   : > { %v573_v26 = vpop.permute.xlu1 %572 }
 0x43f   : > { %v578_v34 = vsel %vm447_vm1, %v573_v26, 0 }
 0x441   : > { %v2023_v28 = vpop.eup %2022 }
 0x442   : > { %v571_v27 = vpop.permute.xlu1 %570  ;;  %v520_v30 = vmul.f32 %v2023_v28, %v2019_v20 }
 0x445   : > { %v2025_v29 = vpop.eup %2024 }
 0x446   : > { %v521_v31 = vmul.f32 %v2025_v29, %v2021_v22  ;;  %v696_v32 = vpop.permute.xlu1 %695 }
 0x447   : > { %1830 = vmatmul.mubr.msk.bf16.vlgmr.msra.gmra.mrb[4].mxu0 %vm447_vm1, %v696_v32 }
 0x448   : > { %v522_v33 = vpack.c.bf16 %v521_v31, %v520_v30  ;;  %1841 = vmatprep.mubr.msk.bf16.mxu0 %vm2119_vm0, %v2118_v36 }
 0x44a   : > { %1812 = vmatmul.mubr.msk.bf16.vlgmr.msra.gmra.mrb[4].mxu1 %vm499_vm2, %v522_v33  ;;  %v823_v35 = vpop.permute.xlu1 %822 }
 0x44b   : > { %1816 = vmatpush3.bf16.xpose.msra.mxu1 %v578_v34  ;;  %v828_v37 = vsel %vm447_vm1, %v823_v35, 0  ;;  %1817 = vmatprep.mubr.msk.bf16.mxu1 %vm2119_vm0, %v2118_v36 }
 0x44c   : > { %1840 = vmatpush3.bf16.xpose.msra.mxu0 %v828_v37  ;;  %1821 = vmatprep.subr.bf16.mxu1 %v2118_v36 }
 0x44d   : > { %1851 = vmatprep.subr.bf16.mxu0 %v2118_v36 }
 0x44e   : > { %v821_v38 = vpop.permute.xlu1 %820 }
 0x452   : > { %1818 = vmatmul.mubr.msk.bf16.vlgmr.msra.gmra.mrb[8].mxu1 %vm447_vm1, %v571_v27 }
 0x453   : > { %1842 = vmatmul.mubr.msk.bf16.vlgmr.msra.gmra.mrb[8].mxu0 %vm447_vm1, %v821_v38  ;;  %1823 = vmatprep.mubr.msk.bf16.mxu1 %vm2119_vm0, %v2118_v36 }
 0x454   : > { %1855 = vmatprep.mubr.msk.bf16.mxu0 %vm2119_vm0, %v2118_v36 }
 0x51a   : > { %v739_v39 = vpop.f32.mrb[4].mxu0 }
 0x51b   : > { %v1831_v40 = vpop.f32.mrb[5].mxu0  ;;  %v746_v51 = vmul.f32 0.35355338, %v739_v39 }
 0x51c   : > { %v742_v41 = vpop.f32.mrb[6].mxu0 }
 0x51d   : > { %v2299_v42 = vpop.f32.mrb[4].mxu1  ;;  %v1832_v43 = vpop.f32.mrb[7].mxu0  ;;  %v747_v57 = vmul.f32 0.35355338, %v742_v41  ;;  %v748_v7 = vadd.f32 %v746_v51, %v2260_v62 }
 0x51e   : > { %v1813_v44 = vpop.f32.mrb[5].mxu1 }
 0x51f   : > { %v2301_v47 = vpop.f32.mrb[6].mxu1  ;;  %v749_v10 = vadd.f32 %v747_v57, %v2265_v4  ;;  %v750_v11 = vsel %vm499_vm2, %v748_v7, -inf }
 0x520   : > { %v1814_v48 = vpop.f32.mrb[7].mxu1 }
 0x521   : > { %v753_v13 = vsel %vm499_vm2, %v749_v10, -inf }
 0x525   : > { %v614_v50 = vpop.f32.mrb[8].mxu1 }
 0x526   : > { %v621_v52 = vmul.f32 0.35355338, %v614_v50  ;;  %v1819_v53 = vpop.f32.mrb[9].mxu1  ;;  %v864_v54 = vpop.f32.mrb[8].mxu0 }
 0x527   : > { %v617_v55 = vpop.f32.mrb[10].mxu1  ;;  %v1843_v56 = vpop.f32.mrb[9].mxu0  ;;  %v871_v3 = vmul.f32 0.35355338, %v864_v54 }
 0x528   : > { %v622_v59 = vmul.f32 0.35355338, %v617_v55  ;;  %v1820_v60 = vpop.f32.mrb[11].mxu1  ;;  %v867_v61 = vpop.f32.mrb[10].mxu0  ;;  %v623_v63 = vadd.f32 %v621_v52, %v2260_v62 }
 0x529   : > { %v1844_v2 = vpop.f32.mrb[11].mxu0  ;;  %v872_v8 = vmul.f32 0.35355338, %v867_v61  ;;  %v873_v12 = vadd.f32 %v871_v3, %v2260_v62 }
 0x52a   : > { %v625_v5 = vsel %vm499_vm2, %v623_v63, -inf  ;;  %v624_v6 = vadd.f32 %v622_v59, %v2265_v4 }
 0x52b   : > { %626 = vmax.xlane.f32.xlu1 %v625_v5  ;;  %v874_v14 = vadd.f32 %v872_v8, %v2265_v4  ;;  %v875_v15 = vsel %vm499_vm2, %v873_v12, -inf }
 0x52c   : > { %v628_v9 = vsel %vm499_vm2, %v624_v6, -inf }
 0x52d   : > { %629 = vmax.xlane.f32.xlu0 %v628_v9  ;;  %v878_v16 = vsel %vm499_vm2, %v874_v14, -inf }
 0x52f   : > { %751 = vmax.xlane.f32.xlu1 %v750_v11 }
 0x531   : > { %754 = vmax.xlane.f32.xlu0 %v753_v13 }
 0x533   : > { %876 = vmax.xlane.f32.xlu1 %v875_v15 }
 0x535   : > { %879 = vmax.xlane.f32.xlu0 %v878_v16 }
 0x5b8   : > { %v627_v17 = vpop.xlane.xlu1 %626 }
 0x5b9   : > { %v631_v23 = vsub.f32 %v623_v63, %v627_v17 }
 0x5ba   : > { %v630_v18 = vpop.xlane.xlu0 %629 }
 0x5bb   : > { %v632_v19 = vsub.f32 %v624_v6, %v630_v18  ;;  %v633_v29 = vmul.f32 1.442695, %v631_v23  ;;  %v2000_v18 = vld [vmem:[%s2198_s10 + $0x4] ss:$16 sps:$4 sm:$0xff]  }
 0x5bc   : > { %v752_v20 = vpop.xlane.xlu1 %751  ;;  %1852 = vmatpush3.bf16.msra.mxu0 %v2000_v18  ;;  %v2001_v23 = vld [vmem:[%s2198_s10 + $0x24] ss:$16 sps:$4 sm:$0xff]  }
 0x5bd   : > { %v756_v21 = vsub.f32 %v748_v7, %v752_v20  ;;  %v635_v25 = vmul.f32 1.442695, %v632_v19  ;;  %1853 = vmatprep.subr.bf16.mxu0 %v2118_v36 }
 0x5be   : > { %v755_v22 = vpop.xlane.xlu0 %754 }
 0x5bf   : > { %v758_v62 = vmul.f32 1.442695, %v756_v21  ;;  %v757_v24 = vsub.f32 %v749_v10, %v755_v22 }
 0x5c0   : > { %v877_v26 = vpop.xlane.xlu1 %876  ;;  %1854 = vmatpush3.bf16.msra.mxu0 %v2001_v23 }
 0x5c1   : > { %2026 = vpow2.f32 %v758_v62  ;;  %v760_v4 = vmul.f32 1.442695, %v757_v24  ;;  %v881_v27 = vsub.f32 %v873_v12, %v877_v26  ;;  %1879 = vmatprep.subr.bf16.mxu0 %v2118_v36 }
 0x5c2   : > { %v880_v28 = vpop.xlane.xlu0 %879 }
 0x5c3   : > { %2028 = vpow2.f32 %v760_v4  ;;  %v883_v30 = vmul.f32 1.442695, %v881_v27  ;;  %v882_v31 = vsub.f32 %v874_v14, %v880_v28 }
 0x5c4   : > { %2030 = vpow2.f32 %v635_v25 }
 0x5c5   : > { %2032 = vpow2.f32 %v883_v30  ;;  %v885_v32 = vmul.f32 1.442695, %v882_v31 }
 0x5c6   : > { %2034 = vpow2.f32 %v633_v29 }
 0x5c7   : > { %2036 = vpow2.f32 %v885_v32 }
 0x5cb   : > { %v2027_v33 = vpop.eup %2026 }
 0x5cc   : > { %v762_v34 = vsel %vm499_vm2, %v2027_v33, 0.0 }
 0x5cd   : > { %v2029_v35 = vpop.eup %2028  ;;  %763 = vadd.xlane.f32.xlu1 %v762_v34 }
 0x5ce   : > { %v2031_v37 = vpop.eup %2030  ;;  %v765_v38 = vsel %vm499_vm2, %v2029_v35, 0.0 }
 0x5cf   : > { %v2033_v39 = vpop.eup %2032  ;;  %766 = vadd.xlane.f32.xlu0 %v765_v38  ;;  %v640_v43 = vsel %vm499_vm2, %v2031_v37, 0.0 }
 0x5d0   : > { %v887_v40 = vsel %vm499_vm2, %v2033_v39, 0.0  ;;  %v2035_v41 = vpop.eup %2034 }
 0x5d1   : > { %888 = vadd.xlane.f32.xlu1 %v887_v40  ;;  %v2037_v44 = vpop.eup %2036  ;;  %v637_v48 = vsel %vm499_vm2, %v2035_v41, 0.0 }
 0x5d2   : > { %v890_v50 = vsel %vm499_vm2, %v2037_v44, 0.0 }
 0x5d3   : > { %641 = vadd.xlane.f32.xlu0 %v640_v43 }
 0x5d5   : > { %638 = vadd.xlane.f32.xlu1 %v637_v48 }
 0x5d7   : > { %891 = vadd.xlane.f32.xlu0 %v890_v50 }
 0x5e6   : > { %648 = vrot.lane.b32.xlu1 %v2248_v58, %s2128_s9 }
 0x5ea   : > { %898 = vrot.lane.b32.xlu1 %v2248_v58, %s2129_s11 }
 0x5ed   : > { %773 = vrot.lane.b32.xlu0 %v2248_v58, %s2130_s12 }
 0x65a   : > { %v764_v51 = vpop.xlane.xlu1 %763 }
 0x65c   : > { %v767_v52 = vpop.xlane.xlu0 %766 }
 0x65e   : > { %v889_v53 = vpop.xlane.xlu1 %888 }
 0x660   : > { %v642_v54 = vpop.xlane.xlu0 %641 }
 0x661   : > { %2038 = vrcp.f32 %v642_v54 }
 0x662   : > { %v639_v55 = vpop.xlane.xlu1 %638 }
 0x663   : > { %2040 = vrcp.f32 %v639_v55 }
 0x664   : > { %2042 = vrcp.f32 %v767_v52  ;;  %v892_v59 = vpop.xlane.xlu0 %891  ;;  %v983_v52 = vsub.s32 1, %v2244_v49 }
 0x665   : > { %2044 = vrcp.f32 %v764_v51 }
 0x666   : > { %v649_v56 = vpop.permute.xlu1 %648  ;;  %2046 = vrcp.f32 %v892_v59 }
 0x667   : > { %1822 = vmatpush3.bf16.msra.mxu1 %v649_v56  ;;  %2048 = vrcp.f32 %v889_v53 }
 0x668   : > { %1833 = vmatprep.subr.bf16.mxu1 %v2118_v36  ;;  %v774_v3 = vpop.permute.xlu0 %773 }
 0x66a   : > { %v899_v10 = vpop.permute.xlu1 %898 }
 0x66b   : > { %v2039_v57 = vpop.eup %2038 }
 0x66c   : > { %v646_v61 = vmul.f32 %v2039_v57, %v2031_v37 }
 0x66d   : > { %v2041_v60 = vpop.eup %2040 }
 0x66e   : > { %v645_v63 = vmul.f32 %v2041_v60, %v2035_v41  ;;  %v2043_v2 = vpop.eup %2042 }
 0x66f   : > { %v2045_v5 = vpop.eup %2044  ;;  %v771_v6 = vmul.f32 %v2043_v2, %v2029_v35  ;;  %v2005_v2 = vld [vmem:[%s2198_s10 + $0x68] ss:$16 sps:$4 sm:$0xff]  }
 0x670   : > { %v647_v58 = vpack.c.bf16 %v646_v61, %v645_v63  ;;  %v770_v7 = vmul.f32 %v2045_v5, %v2027_v33  ;;  %v2047_v9 = vpop.eup %2046  ;;  %v2007_v5 = vld [vmem:[%s2198_s10 + $0xa8] ss:$16 sps:$4 sm:$0xff]  }
 0x671   : > { %v2049_v11 = vpop.eup %2048  ;;  %v896_v12 = vmul.f32 %v2047_v9, %v2037_v44  ;;  %v2011_v9 = vld [vmem:[%s2198_s10 + $0x2c] ss:$16 sps:$4 sm:$0xff]  }
 0x672   : > { %1824 = vmatmul.mubr.msk.bf16.vlgmr.msra.gmra.mrb[12].mxu1 %vm499_vm2, %v647_v58  ;;  %v772_v8 = vpack.c.bf16 %v771_v6, %v770_v7  ;;  %v895_v13 = vmul.f32 %v2049_v11, %v2033_v39  ;;  %v2002_v58 = vld [vmem:[%s2198_s10 + $0x8] ss:$16 sps:$4 sm:$0xff]  }
 0x673   : > { %1834 = vmatpush3.bf16.msra.mxu1 %v774_v3  ;;  %1835 = vmatprep.mubr.msk.bf16.mxu1 %vm2119_vm0, %v2118_v36  ;;  %v2006_v3 = vld [vmem:[%s2198_s10 + $0x88] ss:$16 sps:$4 sm:$0xff]  }
 0x674   : > { %1845 = vmatprep.subr.bf16.mxu1 %v2118_v36  ;;  %v897_v14 = vpack.c.bf16 %v896_v12, %v895_v13  ;;  %v2008_v6 = vld [vmem:[%s2198_s10 + $0xc8] ss:$16 sps:$4 sm:$0xff]  }
 0x675   : > { %v2009_v7 = vld [vmem:[%s2198_s10 + $0xe8] ss:$16 sps:$4 sm:$0xff]  }
 0x67a   : > { %1836 = vmatmul.mubr.msk.bf16.vlgmr.msra.gmra.mrb[16].mxu1 %vm499_vm2, %v772_v8  ;;  %v2010_v8 = vld [vmem:[%s2198_s10 + $0xc] ss:$16 sps:$4 sm:$0xff]  }
 0x67b   : > { %1846 = vmatpush3.bf16.msra.mxu1 %v899_v10  ;;  %1847 = vmatprep.mubr.msk.bf16.mxu1 %vm2119_vm0, %v2118_v36 }
 0x67c   : > { %1859 = vmatprep.subr.bf16.mxu1 %v2118_v36 }
 0x682   : > { %1848 = vmatmul.mubr.msk.bf16.vlgmr.msra.gmra.mrb[20].mxu1 %vm499_vm2, %v897_v14 }
 0x683   : > { %1875 = vmatprep.mubr.msk.bf16.mxu1 %vm2119_vm0, %v2118_v36  ;;  %1860 = vmatpush3.bf16.msra.mxu1 %v2002_v58 }
 0x684   : > { %1861 = vmatprep.subr.bf16.mxu1 %v2118_v36 }
 0x745   : > { %v688_v15 = vpop.f32.mrb[12].mxu1 }
 0x746   : > { %v1825_v16 = vpop.f32.mrb[13].mxu1 }
 0x747   : > { %v691_v17 = vpop.f32.mrb[14].mxu1 }
 0x748   : > { %v1977_v19 = vpack.i.bf16 %v691_v17, %v688_v15  ;;  %v1826_v20 = vpop.f32.mrb[15].mxu1 }
 0x74a   : > { %1978 = vrot.lane.b32.xlu1 %v1977_v19, %s2131_s13 }
 0x74d   : > { %v813_v21 = vpop.f32.mrb[16].mxu1 }
 0x74e   : > { %v1837_v22 = vpop.f32.mrb[17].mxu1 }
 0x74f   : > { %v816_v62 = vpop.f32.mrb[18].mxu1 }
 0x750   : > { %v1982_v24 = vpack.i.bf16 %v816_v62, %v813_v21  ;;  %v1838_v25 = vpop.f32.mrb[19].mxu1  ;;  %v1072_v62 = vsub.s32 4, %v2244_v49 }
 0x752   : > { %1983 = vrot.lane.b32.xlu0 %v1982_v24, %s2132_s14 }
 0x755   : > { %v938_v26 = vpop.f32.mrb[20].mxu1 }
 0x756   : > { %v1849_v4 = vpop.f32.mrb[21].mxu1 }
 0x757   : > { %v941_v27 = vpop.f32.mrb[22].mxu1  ;;  %v1073_v4 = vrot.slane %v2203_v1, %v1072_v62 }
 0x758   : > { %v1987_v28 = vpack.i.bf16 %v941_v27, %v938_v26  ;;  %v1850_v29 = vpop.f32.mrb[23].mxu1  ;;  %v1078_v27 = vsub.s32 5, %v2244_v49 }
 0x75a   : > { %1988 = vrot.lane.b32.xlu1 %v1987_v28, %s2133_s15 }
 0x7bc   : > { %v1979_v30 = vpop.permute.xlu1 %1978 }
 0x7bd   : > { %v1981_v32 = vunpack.i.h.bf16 %v1979_v30  ;;  %v1980_v33 = vunpack.i.l.bf16 %v1979_v30 }
 0x7bf   : > { %v970_v38 = vsel %vm447_vm1, %v2301_v47, %v1981_v32  ;;  %v969_v39 = vsel %vm447_vm1, %v2299_v42, %v1980_v33  ;;  %v984_v47 = vrot.slane %v2203_v1, %v983_v52  ;;  %v1079_v32 = vrot.slane %v2203_v1, %v1078_v27 }
 0x7c0   : > { %v1342_v27 = vsub.s32 6, %v2244_v49 }
 0x7c4   : > { %v1984_v31 = vpop.permute.xlu0 %1983 }
 0x7c5   : > { %v1986_v34 = vunpack.i.h.bf16 %v1984_v31  ;;  %v1985_v35 = vunpack.i.l.bf16 %v1984_v31 }
 0x7c7   : > { %v972_v43 = vsel %vm499_vm2, %v970_v38, %v1986_v34  ;;  %v971_v44 = vsel %vm499_vm2, %v969_v39, %v1985_v35  ;;  %v2012_v38 = vld [vmem:[%s2198_s10 + $0x4c] ss:$16 sps:$4 sm:$0xff]  }
 0x7c8   : > { %v2013_v39 = vld [vmem:[%s2198_s10 + $0x6c] ss:$16 sps:$4 sm:$0xff]  }
 0x7cc   : > { %v1989_v37 = vpop.permute.xlu1 %1988 }
 0x7cd   : > { %v1991_v40 = vunpack.i.h.bf16 %v1989_v37  ;;  %v1990_v41 = vunpack.i.l.bf16 %v1989_v37 }
 0x7cf   : > { %v975_v48 = vsel %vm973_vm3, %v972_v43, %v1991_v40  ;;  %v974_v50 = vsel %vm973_vm3, %v971_v44, %v1990_v41  ;;  %v2014_v40 = vld [vmem:[%s2198_s10 + $0x8c] ss:$16 sps:$4 sm:$0xff]  }
 0x7d0   : > { %v976_v51 = vpack.c.bf16 %v975_v48, %v974_v50  ;;  %v2015_v41 = vld [vmem:[%s2198_s10 + $0xac] ss:$16 sps:$4 sm:$0xff]   ;;  %v1101_v48 = vsub.s32 2, %v2244_v49 }
 0x7d1   : > { %v2016_v43 = vld [vmem:[%s2198_s10 + $0xcc] ss:$16 sps:$4 sm:$0xff]  }
 0x7d2   : > { %1856 = vmatmul.mubr.msk.bf16.vlgmr.msra.gmra.mrb[12].mxu0 %vm997_vm4, %v976_v51  ;;  %v2017_v44 = vld [vmem:[%s2198_s10 + $0xec] ss:$16 sps:$4 sm:$0xff]   ;;  %v1102_v50 = vrot.slane %v2203_v1, %v1101_v48 }
 0x7d3   : > { %1895 = vmatprep.mubr.msk.bf16.mxu0 %vm2119_vm0, %v2118_v36  ;;  %1880 = vmatpush3.bf16.msra.mxu0 %v2010_v8 }
 0x7d4   : > { %1881 = vmatprep.subr.bf16.mxu0 %v2118_v36 }
 0x7d7   : > { %1882 = vmatpush3.bf16.msra.mxu0 %v2011_v9 }
 0x7d8   : > { %1883 = vmatprep.subr.bf16.mxu0 %v2118_v36 }
 0x7db   : > { %1884 = vmatpush3.bf16.msra.mxu0 %v2012_v38 }
 0x7dc   : > { %1885 = vmatprep.subr.bf16.mxu0 %v2118_v36 }
 0x7df   : > { %1886 = vmatpush3.bf16.msra.mxu0 %v2013_v39 }
 0x7e0   : > { %1887 = vmatprep.subr.bf16.mxu0 %v2118_v36 }
 0x7e3   : > { %1888 = vmatpush3.bf16.msra.mxu0 %v2014_v40 }
 0x7e4   : > { %1889 = vmatprep.subr.bf16.mxu0 %v2118_v36 }
 0x7e7   : > { %1890 = vmatpush3.bf16.msra.mxu0 %v2015_v41 }
 0x7e8   : > { %1891 = vmatprep.subr.bf16.mxu0 %v2118_v36 }
 0x7eb   : > { %1892 = vmatpush3.bf16.msra.mxu0 %v2016_v43  ;;  %v2134_v43 = vmov (!%p1694_p5), 0.0  }
 0x7ec   : > { %1893 = vmatprep.subr.bf16.mxu0 %v2118_v36 }
 0x7ef   : > { %1894 = vmatpush3.bf16.msra.mxu0 %v2017_v44  ;;  %v2062_v44 = vld [vmem:[%s2487_s3] ss:$8 sps:$4 sm:$0xff] (!%p1694_p5)  }
 0x7f0   : > { %1899 = vmatprep.subr.bf16.mxu0 (!%p1694_p5), %v2134_v43 }
 0x8a5   : > { %v1035_v42 = vpop.f32.mrb[12].mxu0 }
 0x8a6   : > { %v1036_v53 = vadd.f32 %v1035_v42, %v984_v47  ;;  %v1857_v54 = vpop.f32.mrb[13].mxu0 }
 0x8a7   : > { %v1038_v55 = vpop.f32.mrb[14].mxu0 }
 0x8a8   : > { %v1042_v56 = vadd.f32 %v1036_v53, %v2234_v45  ;;  %v1039_v57 = vadd.f32 %v1038_v55, %v984_v47  ;;  %v1858_v59 = vpop.f32.mrb[15].mxu0  ;;  %v2003_v45 = vld [vmem:[%s2198_s10 + $0x28] ss:$16 sps:$4 sm:$0xff]  }
 0x8a9   : > { %1862 = vmatpush3.bf16.msra.mxu1 %v2003_v45 }
 0x8aa   : > { %v1043_v60 = vadd.f32 %v1039_v57, %v2236_v46  ;;  %1044 = vadd.xlane.f32.xlu0 %v1042_v56  ;;  %v1050_v61 = vmul.f32 %v1042_v56, %v1042_v56  ;;  %1863 = vmatprep.subr.bf16.mxu1 %v2118_v36  ;;  %v2004_v46 = vld [vmem:[%s2198_s10 + $0x48] ss:$16 sps:$4 sm:$0xff]  }
 0x8ac   : > { %1046 = vadd.xlane.f32.xlu1 %v1043_v60  ;;  %v1051_v63 = vmul.f32 %v1043_v60, %v1043_v60 }
 0x8ad   : > { %1864 = vmatpush3.bf16.msra.mxu1 %v2004_v46 }
 0x8ae   : > { %1052 = vadd.xlane.f32.xlu0 %v1050_v61  ;;  %1865 = vmatprep.subr.bf16.mxu1 %v2118_v36 }
 0x8b1   : > { %1866 = vmatpush3.bf16.msra.mxu1 %v2005_v2  ;;  %v1221_v2 = vsub.s32 3, %v2244_v49 }
 0x8b2   : > { %1054 = vadd.xlane.f32.xlu0 %v1051_v63  ;;  %1867 = vmatprep.subr.bf16.mxu1 %v2118_v36 }
 0x8b5   : > { %1868 = vmatpush3.bf16.msra.mxu1 %v2006_v3  ;;  %v1222_v3 = vrot.slane %v2203_v1, %v1221_v2 }
 0x8b6   : > { %1869 = vmatprep.subr.bf16.mxu1 %v2118_v36 }
 0x8b9   : > { %1870 = vmatpush3.bf16.msra.mxu1 %v2007_v5 }
 0x8ba   : > { %1871 = vmatprep.subr.bf16.mxu1 %v2118_v36 }
 0x8bd   : > { %1872 = vmatpush3.bf16.msra.mxu1 %v2008_v6 }
 0x8be   : > { %1873 = vmatprep.subr.bf16.mxu1 %v2118_v36 }
 0x8c1   : > { %1874 = vmatpush3.bf16.msra.mxu1 %v2009_v7 }
 0x8c2   : > { %1919 = vmatprep.subr.bf16.mxu1 (!%p1694_p5), %v2134_v43 }
 0x937   : > { %v1045_v10 = vpop.xlane.xlu0 %1044 }
 0x938   : > { %v1048_v11 = vmul.f32 0.03125, %v1045_v10 }
 0x939   : > { %v1047_v12 = vpop.xlane.xlu1 %1046 }
 0x93a   : > { %v1058_v14 = vmul.f32 %v1048_v11, %v1048_v11  ;;  %v1049_v15 = vmul.f32 0.03125, %v1047_v12  ;;  %v1062_v24 = vsub.f32 %v1042_v56, %v1048_v11 }
 0x93b   : > { %v1053_v13 = vpop.xlane.xlu0 %1052 }
 0x93c   : > { %v1056_v16 = vmul.f32 0.03125, %v1053_v13  ;;  %v1059_v19 = vmul.f32 %v1049_v15, %v1049_v15  ;;  %v1063_v28 = vsub.f32 %v1043_v60, %v1049_v15 }
 0x93e   : > { %v1060_v17 = vsub.f32 %v1056_v16, %v1058_v14 }
 0x93f   : > { %v1055_v18 = vpop.xlane.xlu0 %1054 }
 0x940   : > { %v1064_v20 = vadd.f32 1e-12, %v1060_v17  ;;  %v1057_v21 = vmul.f32 0.03125, %v1055_v18 }
 0x942   : > { %2050 = vrsqrt.f32 %v1064_v20  ;;  %v1061_v22 = vsub.f32 %v1057_v21, %v1059_v19 }
 0x944   : > { %v1065_v23 = vadd.f32 1e-12, %v1061_v22 }
 0x946   : > { %2052 = vrsqrt.f32 %v1065_v23 }
 0x94c   : > { %v2051_v25 = vpop.eup %2050 }
 0x94d   : > { %v1068_v26 = vmul.f32 %v2051_v25, %v1062_v24 }
 0x94f   : > { %v1074_v31 = vmul.f32 %v1073_v4, %v1068_v26 }
 0x950   : > { %v2053_v29 = vpop.eup %2052 }
 0x951   : > { %v1069_v30 = vmul.f32 %v2053_v29, %v1063_v28  ;;  %v1080_v34 = vadd.f32 %v1079_v32, %v1074_v31  ;;  %v1348_v28 = vsub.s32 7, %v2244_v49 }
 0x953   : > { %v1075_v33 = vmul.f32 %v1073_v4, %v1069_v30  ;;  %v1343_v30 = vrot.slane %v2203_v1, %v1342_v27 }
 0x955   : > { %v1081_v35 = vadd.f32 %v1079_v32, %v1075_v33  ;;  %v1349_v33 = vrot.slane %v2203_v1, %v1348_v28  ;;  %v2063_v1 = vld [vmem:[%s2487_s3 + $0x10] ss:$8 sps:$4 sm:$0xff] (!%p1694_p5)  }
 0x957   : > { %v1082_v37 = vpack.c.bf16 %v1081_v35, %v1080_v34 }
 0x959   : > { %1876 = vmatmul.mubr.bf16.vlgmr.msra.gmra.mrb[24].mxu1 %v1082_v37 }
 0x95a   : > { %1935 = vmatprep.mubr.msk.bf16.mxu1 (!%p1694_p5), %vm2135_vm5, %v2134_v43 }
 0xa2c   : > { %v1185_v51 = vpop.f32.mrb[24].mxu1 }
 0xa2d   : > { %v1186_v52 = vadd.f32 %v1185_v51, %v1102_v50  ;;  %v1877_v47 = vpop.f32.mrb[25].mxu1  ;;  %v2070_v51 = vld [vmem:[%s2487_s3 + $0x4] ss:$8 sps:$4 sm:$0xff] (!%p1694_p5)  }
 0xa2e   : > { %v1188_v42 = vpop.f32.mrb[26].mxu1  ;;  %1920 = vmatpush3.bf16.msra.mxu1 (!%p1694_p5), %v2070_v51  ;;  %v2071_v47 = vld [vmem:[%s2487_s3 + $0x14] ss:$8 sps:$4 sm:$0xff] (!%p1694_p5)  }
 0xa2f   : > { %v1194_v53 = vmul.f32 0.70710677, %v1186_v52  ;;  %v1189_v54 = vadd.f32 %v1188_v42, %v1102_v50  ;;  %v1878_v55 = vpop.f32.mrb[27].mxu1  ;;  %v1192_v60 = vmul.f32 0.5, %v1186_v52  ;;  %v2064_v50 = vld [vmem:[%s2487_s3 + $0x20] ss:$8 sps:$4 sm:$0xff] (!%p1694_p5)   ;;  %1921 = vmatprep.subr.bf16.mxu1 (!%p1694_p5), %v2134_v43 }
 0xa30   : > { %v2065_v52 = vld [vmem:[%s2487_s3 + $0x30] ss:$8 sps:$4 sm:$0xff] (!%p1694_p5)   ;;  %v2066_v42 = vld [vmem:[%s2487_s3 + $0x40] ss:$8 sps:$4 sm:$0xff] (!%p1694_p5)   ;;  %v2073_v55 = vld [vmem:[%s2487_s3 + $0x34] ss:$8 sps:$4 sm:$0xff] (!%p1694_p5)  }
 0xa31   : > { %2054 = verf.f32 %v1194_v53  ;;  %v1195_v56 = vmul.f32 0.70710677, %v1189_v54  ;;  %v1193_v61 = vmul.f32 0.5, %v1189_v54  ;;  %v2072_v53 = vld [vmem:[%s2487_s3 + $0x24] ss:$8 sps:$4 sm:$0xff] (!%p1694_p5)  }
 0xa32   : > { %1922 = vmatpush3.bf16.msra.mxu1 (!%p1694_p5), %v2071_v47  ;;  %v2067_v54 = vld [vmem:[%s2487_s3 + $0x50] ss:$8 sps:$4 sm:$0xff] (!%p1694_p5)  }
 0xa33   : > { %2056 = verf.f32 %v1195_v56  ;;  %1923 = vmatprep.subr.bf16.mxu1 (!%p1694_p5), %v2134_v43  ;;  %v2068_v56 = vld [vmem:[%s2487_s3 + $0x60] ss:$8 sps:$4 sm:$0xff] (!%p1694_p5)  }
 0xa36   : > { %1924 = vmatpush3.bf16.msra.mxu1 (!%p1694_p5), %v2072_v53 }
 0xa37   : > { %1925 = vmatprep.subr.bf16.mxu1 (!%p1694_p5), %v2134_v43 }
 0xa3a   : > { %1926 = vmatpush3.bf16.msra.mxu1 (!%p1694_p5), %v2073_v55 }
 0xa3b   : > { %v2055_v57 = vpop.eup %2054  ;;  %1927 = vmatprep.subr.bf16.mxu1 (!%p1694_p5), %v2134_v43 }
 0xa3c   : > { %v1198_v36 = vadd.f32 1.0, %v2055_v57 }
 0xa3d   : > { %v2057_v59 = vpop.eup %2056 }
 0xa3e   : > { %v1199_v63 = vadd.f32 1.0, %v2057_v59  ;;  %v1200_v58 = vmul.f32 %v1198_v36, %v1192_v60  ;;  %v2069_v36 = vld [vmem:[%s2487_s3 + $0x70] ss:$8 sps:$4 sm:$0xff] (!%p1694_p5)  }
 0xa40   : > { %v1201_v45 = vmul.f32 %v1199_v63, %v1193_v61  ;;  %v2074_v61 = vld [vmem:[%s2487_s3 + $0x44] ss:$8 sps:$4 sm:$0xff] (!%p1694_p5)   ;;  %v2075_v63 = vld [vmem:[%s2487_s3 + $0x54] ss:$8 sps:$4 sm:$0xff] (!%p1694_p5)  }
 0xa41   : > { %1928 = vmatpush3.bf16.msra.mxu1 (!%p1694_p5), %v2074_v61 }
 0xa42   : > { %v1202_v46 = vpack.c.bf16 %v1201_v45, %v1200_v58  ;;  %1929 = vmatprep.subr.bf16.mxu1 (!%p1694_p5), %v2134_v43  ;;  %v2076_v58 = vld [vmem:[%s2487_s3 + $0x64] ss:$8 sps:$4 sm:$0xff] (!%p1694_p5)   ;;  %v2077_v45 = vld [vmem:[%s2487_s3 + $0x74] ss:$8 sps:$4 sm:$0xff] (!%p1694_p5)  }
 0xa44   : > { %1896 = vmatmul.mubr.bf16.vlgmr.msra.gmra.mrb[16].mxu0 %v1202_v46  ;;  %v1385_v46 = vrot.slane (!%p1694_p5), %v2192_v0, %v1101_v48 }
 0xa45   : > { %1915 = vmatprep.mubr.msk.bf16.mxu0 (!%p1694_p5), %vm2135_vm5, %v2134_v43  ;;  %1900 = vmatpush3.bf16.msra.mxu0 (!%p1694_p5), %v2062_v44 }
 0xa46   : > { %1901 = vmatprep.subr.bf16.mxu0 (!%p1694_p5), %v2134_v43  ;;  %1930 = vmatpush3.bf16.msra.mxu1 (!%p1694_p5), %v2075_v63 }
 0xa47   : > { %1931 = vmatprep.subr.bf16.mxu1 (!%p1694_p5), %v2134_v43 }
 0xa49   : > { %1902 = vmatpush3.bf16.msra.mxu0 (!%p1694_p5), %v2063_v1 }
 0xa4a   : > { %1903 = vmatprep.subr.bf16.mxu0 (!%p1694_p5), %v2134_v43  ;;  %1932 = vmatpush3.bf16.msra.mxu1 (!%p1694_p5), %v2076_v58 }
 0xa4b   : > { %1933 = vmatprep.subr.bf16.mxu1 (!%p1694_p5), %v2134_v43 }
 0xa4d   : > { %1904 = vmatpush3.bf16.msra.mxu0 (!%p1694_p5), %v2064_v50 }
 0xa4e   : > { %1905 = vmatprep.subr.bf16.mxu0 (!%p1694_p5), %v2134_v43  ;;  %1934 = vmatpush3.bf16.msra.mxu1 (!%p1694_p5), %v2077_v45 }
 0xa51   : > { %1906 = vmatpush3.bf16.msra.mxu0 (!%p1694_p5), %v2065_v52 }
 0xa52   : > { %1907 = vmatprep.subr.bf16.mxu0 (!%p1694_p5), %v2134_v43 }
 0xa55   : > { %1908 = vmatpush3.bf16.msra.mxu0 (!%p1694_p5), %v2066_v42 }
 0xa56   : > { %1909 = vmatprep.subr.bf16.mxu0 (!%p1694_p5), %v2134_v43 }
 0xa59   : > { %1910 = vmatpush3.bf16.msra.mxu0 (!%p1694_p5), %v2067_v54 }
 0xa5a   : > { %1911 = vmatprep.subr.bf16.mxu0 (!%p1694_p5), %v2134_v43 }
 0xa5d   : > { %1912 = vmatpush3.bf16.msra.mxu0 (!%p1694_p5), %v2068_v56 }
 0xa5e   : > { %1913 = vmatprep.subr.bf16.mxu0 (!%p1694_p5), %v2134_v43 }
 0xa61   : > { %1914 = vmatpush3.bf16.msra.mxu0 (!%p1694_p5), %v2069_v36 }
 0xb17   : > { %v1305_v5 = vpop.f32.mrb[16].mxu0 }
 0xb18   : > { %v1306_v6 = vadd.f32 %v1305_v5, %v1222_v3  ;;  %v1897_v7 = vpop.f32.mrb[17].mxu0 }
 0xb19   : > { %v1308_v8 = vpop.f32.mrb[18].mxu0 }
 0xb1a   : > { %v1312_v9 = vadd.f32 %v1306_v6, %v1080_v34  ;;  %v1309_v10 = vadd.f32 %v1308_v8, %v1222_v3  ;;  %v1898_v11 = vpop.f32.mrb[19].mxu0 }
 0xb1b   : > { %v1495_v11 = vrot.slane (!%p1694_p5), %v2192_v0, %v1221_v2 }
 0xb1c   : > { %v1313_v12 = vadd.f32 %v1309_v10, %v1081_v35  ;;  %1314 = vadd.xlane.f32.xlu1 %v1312_v9  ;;  %v1320_v13 = vmul.f32 %v1312_v9, %v1312_v9 }
 0xb1e   : > { %1316 = vadd.xlane.f32.xlu0 %v1313_v12  ;;  %v1321_v14 = vmul.f32 %v1313_v12, %v1313_v12 }
 0xb20   : > { %1322 = vadd.xlane.f32.xlu1 %v1320_v13 }
 0xb22   : > { %1324 = vadd.xlane.f32.xlu0 %v1321_v14 }
 0xba9   : > { %v1315_v15 = vpop.xlane.xlu1 %1314 }
 0xbaa   : > { %v1318_v16 = vmul.f32 0.03125, %v1315_v15 }
 0xbab   : > { %v1317_v17 = vpop.xlane.xlu0 %1316 }
 0xbac   : > { %v1319_v18 = vmul.f32 0.03125, %v1317_v17  ;;  %v1328_v20 = vmul.f32 %v1318_v16, %v1318_v16  ;;  %v1332_v29 = vsub.f32 %v1312_v9, %v1318_v16 }
 0xbad   : > { %v1323_v19 = vpop.xlane.xlu1 %1322 }
 0xbae   : > { %v1326_v21 = vmul.f32 0.03125, %v1323_v19  ;;  %v1329_v23 = vmul.f32 %v1319_v18, %v1319_v18  ;;  %v1333_v32 = vsub.f32 %v1313_v12, %v1319_v18 }
 0xbaf   : > { %v1325_v22 = vpop.xlane.xlu0 %1324 }
 0xbb0   : > { %v1330_v62 = vsub.f32 %v1326_v21, %v1328_v20  ;;  %v1327_v24 = vmul.f32 0.03125, %v1325_v22 }
 0xbb2   : > { %v1334_v25 = vadd.f32 1e-12, %v1330_v62  ;;  %v1331_v26 = vsub.f32 %v1327_v24, %v1329_v23 }
 0xbb4   : > { %2058 = vrsqrt.f32 %v1334_v25  ;;  %v1335_v4 = vadd.f32 1e-12, %v1331_v26 }
 0xbb6   : > { %2060 = vrsqrt.f32 %v1335_v4 }
 0xbbe   : > { %v2059_v31 = vpop.eup %2058 }
 0xbbf   : > { %v1338_v34 = vmul.f32 %v2059_v31, %v1332_v29 }
 0xbc0   : > { %v2061_v35 = vpop.eup %2060 }
 0xbc1   : > { %v1344_v37 = vmul.f32 %v1343_v30, %v1338_v34  ;;  %v1339_v38 = vmul.f32 %v2061_v35, %v1333_v32  ;;  %1357 = sbr.rel (%p1694_p5) target bundleno = 3462 (0xd86), region = 52 }
 0xbc3   : > { %v1350_v39 = vadd.f32 %v1349_v33, %v1344_v37  ;;  %v1345_v40 = vmul.f32 %v1343_v30, %v1339_v38 }
 0xbc5   : > { %1352 = vst [vmem:[#allocation2] sm:$0xff] %v1350_v39  ;;  %v1351_v41 = vadd.f32 %v1349_v33, %v1345_v40 }
 0xbc7   : > { %1353 = vst [vmem:[#allocation2 + $0x8] sm:$0xff] %v1351_v41  ;;  %v1359_v57 = vrot.slane (!%p1694_p5), %v1351_v41, 7 }
 0xbc9   : > { %v1362_v59 = vsel %vm1361_vm6, %v1350_v39, %v1359_v57 }
 0xbca   : > { %v1704_v60 = vpack.c.bf16 %v1362_v59, %v1362_v59 }
 0xbcc   : > { %1916 = vmatmul.mubr.msk.bf16.vlgmr.msra.gmra.mrb[0].mxu0 %vm1703_vm8, %v1704_v60 }
 0xc9f   : > { %v1468_v3 = vpop.f32.mrb[0].mxu0 }
 0xca0   : > { %v1469_v5 = vadd.f32 %v1468_v3, %v1385_v46  ;;  %v1917_v6 = vpop.f32.mrb[1].mxu0 }
 0xca1   : > { %v1471_v7 = vpop.f32.mrb[2].mxu0 }
 0xca2   : > { %2078 = vtanh.f32 %v1469_v5  ;;  %v1918_v8 = vpop.f32.mrb[3].mxu0 }
 0xcac   : > { %v2079_v9 = vpop.eup %2078 }
 0xcad   : > { %v1475_v10 = vpack.c.bf16 %v2079_v9, %v2079_v9 }
 0xcaf   : > { %1936 = vmatmul.mubr.bf16.vlgmr.msra.gmra.mrb[0].mxu1 %v1475_v10 }
 0xd82   : > { %v1578_v12 = vpop.f32.mrb[0].mxu1 }
 0xd83   : > { %v1579_v13 = vadd.f32 %v1578_v12, %v1495_v11  ;;  %v1937_v14 = vpop.f32.mrb[1].mxu1 }
 0xd84   : > { %v1581_v15 = vpop.f32.mrb[2].mxu1 }
 0xd85   : > { %1584 = vst [vmem:[%s2491_s7] sm:$0xff] %v1579_v13  ;;  %v1938_v48 = vpop.f32.mrb[3].mxu1 }
 0xd86 PF: > { %p1943_p6 = scmp.eq.s32.totalorder %s2184_s25, 1  ;;  %s2136_s8 = smov [#allocation2]  }
 0xd87   : > { %s1591_s9 = sshll.u32 %s2136_s8, 4  ;;  %s1592_s9 = int_to_ptr.vmem [resolvable:$true] %s1591_s9 }
 0xd88   : > { %s2080_s11 = scalar_lea.vmem %s1592_s9, 256  ;;  %p2087_p10 = scmp.lt.s32.totalorder %s1592_s9, %s1592_s9 }
 0xd89   : > { %p2081_p7 = scmp.ne.s32.totalorder %s1592_s9, %s2080_s11  ;;  %p2088_p11 = scmp.lt.s32.totalorder %s2080_s11, %s2080_s11 }
 0xd8b   : > { %p2082_p8 = pnand %p2081_p7, %p1943_p6  ;;  %p2089_p12 = por %p2088_p11, %p2087_p10 }
 0xd8d   : > { %p2083_p9 = pneg %p2082_p8 }
 0xd8f   : > { %p2090_p13 = pnand %p2089_p12, %p2083_p9 }
 0xd91   : > { %2093 = shalt.err (!%p2090_p13)
}
 0xd92   : > { %s2094_s15 = scalar_lea.hbm %s2490_s6, 256 }
 0xd93   : > { %p2095_p0 = scmp.ne.s32.totalorder %s2490_s6, %s2094_s15  ;;  %p2100_p3 = scmp.lt.u32.totalorder %s2094_s15, %s2490_s6 }
 0xd95   : > { %p2096_p1 = pnand %p2095_p0, %p1943_p6 }
 0xd97   : > { %p2097_p2 = pneg %p2096_p1 }
 0xd99   : > { %p2102_p4 = pnand %p2100_p3, %p2097_p2 }
 0xd9b   : > { %2105 = shalt.err (!%p2102_p4)
}
 0xd9c   : > { %s2137_s19 = smov 128  }
 0xd9d   : > { %1940 = dma.vmem_to_hbm [thread:$0]  (%p1943_p6), %s1592_s9, 256, %s2490_s6, [#allocation3], %s2137_s19, %s2137_s19, %s2131_s13  }
 0xd9e   : > { %2111 = dma.done.wait (%p1943_p6), [#allocation3], 256  }
 0xd9f   : > { %2113 = vsyncadd (%p1943_p6), [#allocation3], 4294967040 }
 0xda0 PF: > { %s19_s24 = sadd.s32 1, %s2116_s24  }
 0xda1   : > { %p16_p5 = scmp.ge.s32.totalorder %s19_s24, 4  }
 0xda3   :  { %18 = sbr.rel (!%p16_p5) target bundleno = 1 (0x1), region = 90 }
 0xdaa   :  { %1613 = vsyncpa [#allocation3], 1 }
 0xdab   :  { %1615 = vsyncpa [#allocation3 + $0x1], 1 }

</bundles_post_ra>
